<compile_context>
chip_gen: v6e
topology: v6e:2x2x1
jax: 0.10.0
libtpu: 0.0.40
codegen_flags: <defaults>
</compile_context>

<pallas_src>
import math
import numpy as np
import jax
import jax.numpy as jnp
from jax.experimental import pallas as pl
from jax.experimental.pallas import tpu as pltpu

# ----------------------------------------------------------------------------
# Module configuration (groups=1, normalization='component', parity=0)
# Rs convention: list of (multiplicity, l)
# ----------------------------------------------------------------------------
Rs_in1 = [(4, 0), (4, 1)]
Rs_in2 = [(4, 0), (4, 1)]
Rs_out = [(4, 0), (4, 1)]


def rs_dim(Rs):
    return sum(m * (2 * l + 1) for m, l in Rs)


def wigner_3j(l_out, l1, l2):
    """Real-basis Wigner 3j for l <= 1 (e3nn convention, up to global sign)."""
    # TODO(synk): general-l wigner_3j (complex->real change of basis) not
    # reimplemented; only the l<=1 couplings needed for this Rs config.
    if (l_out, l1, l2) == (0, 0, 0):
        return np.ones((1, 1, 1))
    if (l_out, l1, l2) == (1, 1, 0):
        return np.eye(3).reshape(3, 3, 1) / math.sqrt(3)
    if (l_out, l1, l2) == (1, 0, 1):
        return np.eye(3).reshape(3, 1, 3) / math.sqrt(3)
    if (l_out, l1, l2) == (0, 1, 1):
        return np.eye(3).reshape(1, 3, 3) / math.sqrt(3)
    if (l_out, l1, l2) == (1, 1, 1):
        eps = np.zeros((3, 3, 3))
        for a, b, c in [(0, 1, 2), (1, 2, 0), (2, 0, 1)]:
            eps[a, b, c] = 1.0
            eps[a, c, b] = -1.0
        return eps / math.sqrt(6)
    raise NotImplementedError((l_out, l1, l2))


def build_paths():
    """Mirror of the torch code-generation loop (groups=1)."""
    paths = []
    index_w = 0
    count = np.zeros(rs_dim(Rs_out), np.float64)
    index_1 = 0
    for mul_1, l_1 in Rs_in1:
        dim_1 = mul_1 * (2 * l_1 + 1)
        index_2 = 0
        for mul_2, l_2 in Rs_in2:
            dim_2 = mul_2 * (2 * l_2 + 1)
            index_out = 0
            for mul_out, l_out in Rs_out:
                dim_out_blk = mul_out * (2 * l_out + 1)
                if abs(l_1 - l_2) <= l_out <= l_1 + l_2:  # selection rule, parity 0
                    C = wigner_3j(l_out, l_1, l_2) * math.sqrt(2 * l_out + 1)  # component norm
                    paths.append(dict(i1=index_1, i2=index_2, io=index_out, iw=index_w,
                                      mul1=mul_1, mul2=mul_2, mulo=mul_out,
                                      l1=l_1, l2=l_2, lo=l_out, C=C.astype(np.float32)))
                    count[index_out:index_out + dim_out_blk] += mul_1 * mul_2
                    index_w += mul_out * mul_1 * mul_2
                index_out += dim_out_blk
            index_2 += dim_2
        index_1 += dim_1
    return paths, index_w, count


D1 = rs_dim(Rs_in1)          # 16
D2 = rs_dim(Rs_in2)          # 16
DOUT = rs_dim(Rs_out)        # 16
PATHS, NWEIGHT, COUNT = build_paths()   # NWEIGHT = 320


def build_constants():
    # Full coupling tensor T[o, c, a, b] (includes normalization scale).
    T = np.zeros((DOUT, NWEIGHT, D1, D2), np.float32)
    for p in PATHS:
        C = p['C']
        Ko, Ki, Kj = C.shape
        for wo in range(p['mulo']):
            for u in range(p['mul1']):
                for v in range(p['mul2']):
                    c = p['iw'] + (wo * p['mul1'] + u) * p['mul2'] + v
                    for k in range(Ko):
                        o = p['io'] + wo * Ko + k
                        for i in range(Ki):
                            a = p['i1'] + u * Ki + i
                            for j in range(Kj):
                                b = p['i2'] + v * Kj + j
                                T[o, c, a, b] += C[k, i, j]
    scale = np.where(COUNT > 1, 1.0 / np.sqrt(np.maximum(COUNT, 1.0)), 1.0).astype(np.float32)
    T *= scale[:, None, None, None]

    # Group output channels by identical (a, b) sparsity pattern: outputs in a
    # group are the NREP multiplicity copies of one irrep component, so the
    # kron gather is computed once per group (KDIST distinct lanes).
    patterns, groups = [], []
    for o in range(DOUT):
        mask = np.any(T[o] != 0.0, axis=0)                # [D1, D2]
        aa, bb = np.nonzero(mask)
        key = tuple(zip(aa.tolist(), bb.tolist()))
        if key in patterns:
            g = patterns.index(key)
        else:
            g = len(patterns)
            patterns.append(key)
            groups.append([])
        groups[g].append(o)

    nrep = len(groups[0])
    assert all(len(g) == nrep for g in groups), "output groups must share multiplicity"

    ab_list = [ab for pat in patterns for ab in pat]
    g_list = [gi for gi, pat in enumerate(patterns) for _ in pat]
    kdist = len(ab_list)                                   # 256 for this config
    kcols = nrep * kdist                                   # 1024 (pruned from 4096)
    assert kdist % 128 == 0, "distinct kron slab should be lane-aligned"

    # Fused block-diagonal lane-expansion: [x1 | x2] @ RC gives, per distinct
    # column d, x1[a(d)] in the first KDIST lanes and x2[b(d)] in the second.
    RC = np.zeros((D1 + D2, 2 * kdist), np.float32)
    for idx, (a, b) in enumerate(ab_list):
        RC[a, idx] = 1.0
        RC[D1 + b, kdist + idx] = 1.0

    # One-hot weight-gather matrix GMAT (pure 0/1, exact in bf16), the
    # rep-independent per-distinct-column coefficient COEF, and the per-rep
    # 0/1 segmented-sum matrices SUMM.  Column layout: col = r * kdist + d.
    GMAT = np.zeros((NWEIGHT, kcols), np.float32)
    COEF = np.zeros((kdist,), np.float32)
    SUMM = np.zeros((nrep, kdist, DOUT), np.float32)
    for idx, (a, b) in enumerate(ab_list):
        g = g_list[idx]
        col_coef = None
        for r in range(nrep):
            o = groups[g][r]
            colvals = T[o, :, a, b]
            nz = np.nonzero(colvals)[0]
            assert nz.size == 1, "each active (o,a,b) column must map to exactly one weight"
            c = int(nz[0])
            val = float(colvals[c])
            if col_coef is None:
                col_coef = val
            else:
                assert abs(val - col_coef) < 1e-6, "coefficient must be rep-independent"
            GMAT[c, r * kdist + idx] = 1.0
            SUMM[r, idx, o] = 1.0
        COEF[idx] = col_coef

    return (nrep, kdist, kcols,
            jnp.asarray(GMAT, jnp.bfloat16),               # exact 0/1 in bf16
            jnp.asarray(RC, jnp.float32),
            jnp.asarray(COEF.reshape(1, kdist), jnp.float32),
            jnp.asarray(SUMM, jnp.float32))


NREP, KDIST, KCOLS, GMAT, RC, COEF, SUMM = build_constants()


# ----------------------------------------------------------------------------
# Pallas kernel
# ----------------------------------------------------------------------------
def wtp_kernel(x12_ref, w_ref, gmat_ref, rc_ref, coef_ref, sum_ref, out_ref):
    x12 = x12_ref[...].astype(jnp.float32)     # [Bt, D1+D2]
    w = w_ref[...].astype(jnp.float32)         # [Bt, NWEIGHT]

    # Fused one-hot lane expansion (f32 keeps the kron factors exact), then
    # the rep-independent Wigner*norm coefficient via one VPU multiply.
    xg = jnp.dot(x12, rc_ref[...], preferred_element_type=jnp.float32)   # [Bt, 2*KDIST]
    kron = xg[:, :KDIST] * xg[:, KDIST:] * coef_ref[...]                 # [Bt, KDIST]

    # Exact bf16 MXU gather of w.  GMAT is one-hot 0/1 (exact in bf16); the
    # hi/lo split keeps ~17 mantissa bits of w (~4e-6 rel.), accumulated f32.
    w_hi = w.astype(jnp.bfloat16)
    w_lo = (w - w_hi.astype(jnp.float32)).astype(jnp.bfloat16)
    gm = gmat_ref[...]
    wt = (jnp.dot(w_hi, gm, preferred_element_type=jnp.float32)
          + jnp.dot(w_lo, gm, preferred_element_type=jnp.float32))       # [Bt, KCOLS]

    # Per-rep 256-lane slabs (lane-aligned static slices): multiply by the
    # shared kron slab and segment-sum into the output — no [Bt, KCOLS]
    # concat/prod intermediates.
    out = None
    for r in range(NREP):
        prod_r = wt[:, r * KDIST:(r + 1) * KDIST] * kron                 # [Bt, KDIST]
        part = jnp.dot(prod_r, sum_ref[r], preferred_element_type=jnp.float32)  # [Bt, DOUT]
        out = part if out is None else out + part
    out_ref[...] = out.astype(out_ref.dtype)


def weighted_tensor_product(features_1, features_2, weights, *, block_b=512):
    """block_b: batch-tile rows per grid step (multiple of 8).  512 fills the
    MXU M dimension and amortizes per-step overhead; sweep 256/512/1024 when
    tuning per generation."""
    size = features_1.shape[:-1]
    assert features_1.shape[-1] == D1
    assert features_2.shape[-1] == D2
    assert features_2.shape[:-1] == size
    x1 = features_1.reshape(-1, D1)
    x2 = features_2.reshape(-1, D2)
    w = weights.reshape(-1, NWEIGHT)
    B = x1.shape[0]
    x12 = jnp.concatenate([x1, x2], axis=-1)               # [B, D1+D2]

    # Batch tile: as large as block_b, but capped so the grid has >= 2 steps
    # whenever B > 8 (v7x shards the "parallel" axis across its 2 TCs); small
    # batches only pad to the next multiple of 8.
    blk = max(8, min(block_b, pl.cdiv(B, 2 * 8) * 8))
    Bp = pl.cdiv(B, blk) * blk
    if Bp != B:
        pad = Bp - B
        x12 = jnp.pad(x12, ((0, pad), (0, 0)))
        w = jnp.pad(w, ((0, pad), (0, 0)))

    # Constants total ~0.8 MiB (bf16 GMAT + small f32 matrices); default
    # double-buffering of them costs <1 MiB, so no pipeline_mode override is
    # needed even inside v7x's 64 MiB/TC.  Live VMEM at blk=512 is ~8 MiB.
    out = pl.pallas_call(
        wtp_kernel,
        out_shape=jax.ShapeDtypeStruct((Bp, DOUT), features_1.dtype),
        grid_spec=pltpu.PrefetchScalarGridSpec(
            num_scalar_prefetch=0,
            grid=(Bp // blk,),
            in_specs=[
                pl.BlockSpec((blk, D1 + D2), lambda i: (i, 0)),
                pl.BlockSpec((blk, NWEIGHT), lambda i: (i, 0)),
                pl.BlockSpec((NWEIGHT, KCOLS), lambda i: (0, 0)),
                pl.BlockSpec((D1 + D2, 2 * KDIST), lambda i: (0, 0)),
                pl.BlockSpec((1, KDIST), lambda i: (0, 0)),
                pl.BlockSpec((NREP, KDIST, DOUT), lambda i: (0, 0, 0)),
            ],
            out_specs=pl.BlockSpec((blk, DOUT), lambda i: (i, 0)),
        ),
        compiler_params=pltpu.CompilerParams(
            dimension_semantics=("parallel",),
            vmem_limit_bytes=32 * 1024 * 1024,
        ),
    )(x12, w, GMAT, RC, COEF, SUMM)
    return out[:B].reshape(*size, DOUT)


# ----------------------------------------------------------------------------
# Pure-JAX reference (mirrors the torch-generated einsum code path-by-path)
# ----------------------------------------------------------------------------
def reference(features_1, features_2, weights):
    size = features_1.shape[:-1]
    x1 = features_1.reshape(-1, D1)
    x2 = features_2.reshape(-1, D2)
    w = weights.reshape(-1, NWEIGHT)
    batch = x1.shape[0]
    out = jnp.zeros((batch, DOUT), jnp.float32)
    for p in PATHS:
        d1b, d2b, dob = 2 * p['l1'] + 1, 2 * p['l2'] + 1, 2 * p['lo'] + 1
        s1 = x1[:, p['i1']:p['i1'] + p['mul1'] * d1b].reshape(batch, p['mul1'], d1b)
        s2 = x2[:, p['i2']:p['i2'] + p['mul2'] * d2b].reshape(batch, p['mul2'], d2b)
        ss = jnp.einsum('zui,zvj->zuvij', s1, s2)
        sw = w[:, p['iw']:p['iw'] + p['mulo'] * p['mul1'] * p['mul2']].reshape(
            batch, p['mulo'], p['mul1'], p['mul2'])
        blk = jnp.einsum('zwuv,kij,zuvij->zwk', sw, jnp.asarray(p['C']), ss)
        out = out.at[:, p['io']:p['io'] + p['mulo'] * dob].add(
            blk.reshape(batch, p['mulo'] * dob))
    scale = np.where(COUNT > 1, 1.0 / np.sqrt(np.maximum(COUNT, 1.0)), 1.0).astype(np.float32)
    out = out * jnp.asarray(scale)[None, :]
    return out.reshape(*size, DOUT)


if __name__ == "__main__":
    key = jax.random.PRNGKey(0)

    # test 1: batch 2x8 = 16 rows (exercises the >=2-step grid path)
    k1, k2, k3, k4, k5, k6 = jax.random.split(key, 6)
    lead = (2, 8)
    f1 = jax.random.normal(k1, (*lead, D1), jnp.float32)
    f2 = jax.random.normal(k2, (*lead, D2), jnp.float32)
    wts = jax.random.normal(k3, (*lead, NWEIGHT), jnp.float32) * 0.1
    out = jax.block_until_ready(weighted_tensor_product(f1, f2, wts))
    ref = reference(f1, f2, wts)
    assert out.shape == (*lead, DOUT), out.shape
    np.testing.assert_allclose(np.asarray(out), np.asarray(ref), rtol=2e-4, atol=2e-4)

    # test 2: ragged batch of 5 rows (exercises the padding / min-tile path)
    lead2 = (5,)
    g1 = jax.random.normal(k4, (*lead2, D1), jnp.float32)
    g2 = jax.random.normal(k5, (*lead2, D2), jnp.float32)
    gw = jax.random.normal(k6, (*lead2, NWEIGHT), jnp.float32) * 0.1
    out2 = jax.block_until_ready(weighted_tensor_product(g1, g2, gw))
    ref2 = reference(g1, g2, gw)
    assert out2.shape == (*lead2, DOUT), out2.shape
    np.testing.assert_allclose(np.asarray(out2), np.asarray(ref2), rtol=2e-4, atol=2e-4)

    print("KERNEL_OK")
</pallas_src>

<mosaic_0001>
module attributes {stable_mosaic.version = 11 : i64} {
  func.func @wtp_kernel(%arg0: i32, %arg1: memref<8x32xf32, #tpu.memory_space<vmem>>, %arg2: memref<8x320xf32, #tpu.memory_space<vmem>>, %arg3: memref<320x1024xbf16, #tpu.memory_space<vmem>>, %arg4: memref<32x512xf32, #tpu.memory_space<vmem>>, %arg5: memref<1x256xf32, #tpu.memory_space<vmem>>, %arg6: memref<4x256x16xf32, #tpu.memory_space<vmem>>, %arg7: memref<8x16xf32, #tpu.memory_space<vmem>>) attributes {dimension_semantics = [#tpu.dimension_semantics<parallel>], iteration_bounds = array<i64: 2>, scalar_prefetch = 0 : i64, scratch_operands = 0 : i64, tpu.core_type = #tpu.core_type<tc>, window_params = [{transform_indices = @transform_0, window_bounds = array<i64: 8, 32>}, {transform_indices = @transform_1, window_bounds = array<i64: 8, 320>}, {pipeline_mode = #tpu.pipeline_mode<synchronous>, transform_indices = @transform_2, window_bounds = array<i64: 320, 1024>}, {pipeline_mode = #tpu.pipeline_mode<synchronous>, transform_indices = @transform_3, window_bounds = array<i64: 32, 512>}, {pipeline_mode = #tpu.pipeline_mode<synchronous>, transform_indices = @transform_4, window_bounds = array<i64: 1, 256>}, {pipeline_mode = #tpu.pipeline_mode<synchronous>, transform_indices = @transform_5, window_bounds = array<i64: 4, 256, 16>}, {transform_indices = @transform_6, window_bounds = array<i64: 8, 16>}]} {
    %c0 = arith.constant 0 : index
    %c0_0 = arith.constant 0 : index
    %0 = vector.load %arg1[%c0, %c0_0] : memref<8x32xf32, #tpu.memory_space<vmem>>, vector<8x32xf32>
    %c0_1 = arith.constant 0 : index
    %c0_2 = arith.constant 0 : index
    %1 = vector.load %arg2[%c0_1, %c0_2] : memref<8x320xf32, #tpu.memory_space<vmem>>, vector<8x320xf32>
    %c0_3 = arith.constant 0 : index
    %c0_4 = arith.constant 0 : index
    %2 = vector.load %arg4[%c0_3, %c0_4] : memref<32x512xf32, #tpu.memory_space<vmem>>, vector<32x512xf32>
    %cst = arith.constant dense<0.000000e+00> : vector<8x512xf32>
    %3 = tpu.matmul %0, %2, %cst {dimension_numbers = #tpu.dot_dimension_numbers<[1], [0], [0], [1], [0, 0, 1, 1], [], []>} : vector<8x32xf32>, vector<32x512xf32>, vector<8x512xf32> -> vector<8x512xf32>
    %4 = vector.extract_strided_slice %3 {offsets = [0, 0], sizes = [8, 256], strides = [1, 1]} : vector<8x512xf32> to vector<8x256xf32>
    %5 = vector.extract_strided_slice %3 {offsets = [0, 256], sizes = [8, 256], strides = [1, 1]} : vector<8x512xf32> to vector<8x256xf32>
    %6 = arith.mulf %4, %5 : vector<8x256xf32>
    %c0_5 = arith.constant 0 : index
    %c0_6 = arith.constant 0 : index
    %7 = vector.load %arg5[%c0_5, %c0_6] : memref<1x256xf32, #tpu.memory_space<vmem>>, vector<1x256xf32>
    %8 = vector.broadcast %7 : vector<1x256xf32> to vector<8x256xf32>
    %9 = arith.mulf %6, %8 : vector<8x256xf32>
    %10 = arith.truncf %1 : vector<8x320xf32> to vector<8x320xbf16>
    %11 = arith.extf %10 : vector<8x320xbf16> to vector<8x320xf32>
    %12 = arith.subf %1, %11 : vector<8x320xf32>
    %13 = arith.truncf %12 : vector<8x320xf32> to vector<8x320xbf16>
    %c0_7 = arith.constant 0 : index
    %c0_8 = arith.constant 0 : index
    %14 = vector.load %arg3[%c0_7, %c0_8] : memref<320x1024xbf16, #tpu.memory_space<vmem>>, vector<320x1024xbf16>
    %cst_9 = arith.constant dense<0.000000e+00> : vector<8x1024xf32>
    %15 = tpu.matmul %10, %14, %cst_9 {dimension_numbers = #tpu.dot_dimension_numbers<[1], [0], [0], [1], [0, 0, 1, 1], [], []>} : vector<8x320xbf16>, vector<320x1024xbf16>, vector<8x1024xf32> -> vector<8x1024xf32>
    %cst_10 = arith.constant dense<0.000000e+00> : vector<8x1024xf32>
    %16 = tpu.matmul %13, %14, %cst_10 {dimension_numbers = #tpu.dot_dimension_numbers<[1], [0], [0], [1], [0, 0, 1, 1], [], []>} : vector<8x320xbf16>, vector<320x1024xbf16>, vector<8x1024xf32> -> vector<8x1024xf32>
    %17 = arith.addf %15, %16 : vector<8x1024xf32>
    %18 = vector.extract_strided_slice %17 {offsets = [0, 0], sizes = [8, 256], strides = [1, 1]} : vector<8x1024xf32> to vector<8x256xf32>
    %19 = arith.mulf %18, %9 : vector<8x256xf32>
    %c0_11 = arith.constant 0 : index
    %c0_12 = arith.constant 0 : index
    %c0_13 = arith.constant 0 : index
    %20 = vector.load %arg6[%c0_11, %c0_12, %c0_13] : memref<4x256x16xf32, #tpu.memory_space<vmem>>, vector<1x256x16xf32>
    %21 = vector.shape_cast %20 : vector<1x256x16xf32> to vector<256x16xf32>
    %cst_14 = arith.constant dense<0.000000e+00> : vector<8x16xf32>
    %22 = tpu.matmul %19, %21, %cst_14 {dimension_numbers = #tpu.dot_dimension_numbers<[1], [0], [0], [1], [0, 0, 1, 1], [], []>} : vector<8x256xf32>, vector<256x16xf32>, vector<8x16xf32> -> vector<8x16xf32>
    %23 = vector.extract_strided_slice %17 {offsets = [0, 256], sizes = [8, 256], strides = [1, 1]} : vector<8x1024xf32> to vector<8x256xf32>
    %24 = arith.mulf %23, %9 : vector<8x256xf32>
    %c1 = arith.constant 1 : index
    %c0_15 = arith.constant 0 : index
    %c0_16 = arith.constant 0 : index
    %25 = vector.load %arg6[%c1, %c0_15, %c0_16] : memref<4x256x16xf32, #tpu.memory_space<vmem>>, vector<1x256x16xf32>
    %26 = vector.shape_cast %25 : vector<1x256x16xf32> to vector<256x16xf32>
    %cst_17 = arith.constant dense<0.000000e+00> : vector<8x16xf32>
    %27 = tpu.matmul %24, %26, %cst_17 {dimension_numbers = #tpu.dot_dimension_numbers<[1], [0], [0], [1], [0, 0, 1, 1], [], []>} : vector<8x256xf32>, vector<256x16xf32>, vector<8x16xf32> -> vector<8x16xf32>
    %28 = arith.addf %22, %27 : vector<8x16xf32>
    %29 = vector.extract_strided_slice %17 {offsets = [0, 512], sizes = [8, 256], strides = [1, 1]} : vector<8x1024xf32> to vector<8x256xf32>
    %30 = arith.mulf %29, %9 : vector<8x256xf32>
    %c2 = arith.constant 2 : index
    %c0_18 = arith.constant 0 : index
    %c0_19 = arith.constant 0 : index
    %31 = vector.load %arg6[%c2, %c0_18, %c0_19] : memref<4x256x16xf32, #tpu.memory_space<vmem>>, vector<1x256x16xf32>
    %32 = vector.shape_cast %31 : vector<1x256x16xf32> to vector<256x16xf32>
    %cst_20 = arith.constant dense<0.000000e+00> : vector<8x16xf32>
    %33 = tpu.matmul %30, %32, %cst_20 {dimension_numbers = #tpu.dot_dimension_numbers<[1], [0], [0], [1], [0, 0, 1, 1], [], []>} : vector<8x256xf32>, vector<256x16xf32>, vector<8x16xf32> -> vector<8x16xf32>
    %34 = arith.addf %28, %33 : vector<8x16xf32>
    %35 = vector.extract_strided_slice %17 {offsets = [0, 768], sizes = [8, 256], strides = [1, 1]} : vector<8x1024xf32> to vector<8x256xf32>
    %36 = arith.mulf %35, %9 : vector<8x256xf32>
    %c3 = arith.constant 3 : index
    %c0_21 = arith.constant 0 : index
    %c0_22 = arith.constant 0 : index
    %37 = vector.load %arg6[%c3, %c0_21, %c0_22] : memref<4x256x16xf32, #tpu.memory_space<vmem>>, vector<1x256x16xf32>
    %38 = vector.shape_cast %37 : vector<1x256x16xf32> to vector<256x16xf32>
    %cst_23 = arith.constant dense<0.000000e+00> : vector<8x16xf32>
    %39 = tpu.matmul %36, %38, %cst_23 {dimension_numbers = #tpu.dot_dimension_numbers<[1], [0], [0], [1], [0, 0, 1, 1], [], []>} : vector<8x256xf32>, vector<256x16xf32>, vector<8x16xf32> -> vector<8x16xf32>
    %40 = arith.addf %34, %39 : vector<8x16xf32>
    %c0_24 = arith.constant 0 : index
    %c0_25 = arith.constant 0 : index
    %41 = vector.load %arg7[%c0_24, %c0_25] : memref<8x16xf32, #tpu.memory_space<vmem>>, vector<8x16xf32>
    tpu.vector_store %arg7[%c0_24, %c0_25], %40 {strides = array<i32>} : memref<8x16xf32, #tpu.memory_space<vmem>>, vector<8x16xf32>,
    return
  }
  func.func @transform_0(%arg0: i32) -> (i32, i32) {
    %c0_i32 = arith.constant 0 : i32
    %c0_i32_0 = arith.constant 0 : i32
    return %arg0, %c0_i32 : i32, i32
  }
  func.func @transform_1(%arg0: i32) -> (i32, i32) {
    %c0_i32 = arith.constant 0 : i32
    %c0_i32_0 = arith.constant 0 : i32
    return %arg0, %c0_i32 : i32, i32
  }
  func.func @transform_2(%arg0: i32) -> (i32, i32) {
    %c0_i32 = arith.constant 0 : i32
    %c0_i32_0 = arith.constant 0 : i32
    %c0_i32_1 = arith.constant 0 : i32
    return %c0_i32, %c0_i32_0 : i32, i32
  }
  func.func @transform_3(%arg0: i32) -> (i32, i32) {
    %c0_i32 = arith.constant 0 : i32
    %c0_i32_0 = arith.constant 0 : i32
    %c0_i32_1 = arith.constant 0 : i32
    return %c0_i32, %c0_i32_0 : i32, i32
  }
  func.func @transform_4(%arg0: i32) -> (i32, i32) {
    %c0_i32 = arith.constant 0 : i32
    %c0_i32_0 = arith.constant 0 : i32
    %c0_i32_1 = arith.constant 0 : i32
    return %c0_i32, %c0_i32_0 : i32, i32
  }
  func.func @transform_5(%arg0: i32) -> (i32, i32, i32) {
    %c0_i32 = arith.constant 0 : i32
    %c0_i32_0 = arith.constant 0 : i32
    %c0_i32_1 = arith.constant 0 : i32
    %c0_i32_2 = arith.constant 0 : i32
    return %c0_i32, %c0_i32_0, %c0_i32_1 : i32, i32, i32
  }
  func.func @transform_6(%arg0: i32) -> (i32, i32) {
    %c0_i32 = arith.constant 0 : i32
    %c0_i32_0 = arith.constant 0 : i32
    return %arg0, %c0_i32 : i32, i32
  }
}

</mosaic_0001>

<bundles_post_ra>
// kernel: tpu_custom_call.1
= control target key start
LH: loop header
LB: loop body
LE: loop exit
PB: predicated region body
PF: predicated region fallthrough
CT: control target
= control target key end

     0   :  { %11 = vsyncpa [#allocation3], 0  ;;  %s4529_s0 = inlined_call_operand.vmem [shape: f32[16,32], index: 0, kind: input, shape index: {}]   ;;  %s4530_s1 = inlined_call_operand.vmem [shape: f32[16,320], index: 1, kind: input, shape index: {}]   ;;  %s4531_s2 = inlined_call_operand.hbm [shape: bf16[320,1024], index: 2, kind: input, shape index: {}]   ;;  %s4532_s3 = inlined_call_operand.vmem [shape: f32[32,512], index: 3, kind: input, shape index: {}]   ;;  %s4533_s4 = inlined_call_operand.vmem [shape: f32[1,256], index: 4, kind: input, shape index: {}]   ;;  %s4534_s5 = inlined_call_operand.vmem [shape: f32[4,256,16], index: 5, kind: input, shape index: {}]   ;;  %s4535_s6 = inlined_call_operand.hbm [shape: f32[16,16], index: 6, kind: output, shape index: {}]  }
   0x1   :  { %12 = vsyncpa [#allocation4], 0 }
   0x2   :  { %14 = vsyncpa [#allocation4 + $0x1], 0  ;;  %s3227_s21 = smov 0   ;;  %s3229_s22 = smov 0  }
   0x3   :  { %s3231_s23 = smov 0   ;;  %s3233_s24 = smov 0  }
   0x4 LB: > { %s3248_s25 = sadd.s32 4294967295, %s3184_s24   ;;  %s2620_s26 = sadd.s32 4294967294, %s3184_s24   ;;  %s3184_s24 = sphi %s3233_s24, %s4877_s24   ;;  %s3180_s23 = sphi %s3231_s23, %s4876_s23   ;;  %s3176_s22 = sphi %s3229_s22, %s4875_s22   ;;  %s3172_s21 = sphi %s3227_s21, %s4874_s21  }
   0x5   : > { %s3252_s27 = sadd.s32 1, %s3184_s24   ;;  %s163_s28 = sadd.s32 1, %s3180_s23 }
   0x6   : > { %s160_s29 = ssub.s32 %s3184_s24, %s3252_s27  ;;  %p173_p0 = scmp.ne.s32.totalorder %s3180_s23, %s3176_s22 }
   0x7   : > { %p161_p1 = scmp.eq.s32.totalorder %s160_s29, 0  ;;  %p174_p2 = scmp.eq.s32.totalorder %s3248_s25, 1 }
   0x8   : > { %p179_p3 = scmp.ne.s32.totalorder %s3176_s22, %s3172_s21  ;;  %p180_p4 = scmp.eq.s32.totalorder %s2620_s26, 1 }
   0x9   : > { %s3263_s30 = scalar_select %p161_p1, %s3180_s23, %s163_s28  }
   0xa   : > { %p3265_p5 = por %p174_p2, %p173_p0  ;;  %p3269_p6 = por %p180_p4, %p179_p3 }
   0xb   : > { %p2621_p7 = scmp.ge.s32.totalorder %s3184_s24, 1  ;;  %p187_p8 = scmp.lt.s32.totalorder %s3184_s24, 3 }
   0xc   : > { %s4650_s8 = scalar_select %p3269_p6, 1, 0 }
   0xd   : > { %p3054_p9 = scmp.eq.s32.totalorder %s3248_s25, 0  ;;  %p3276_p10 = pnand %p2621_p7, %p187_p8 }
   0xe   : > { %s3186_s10 = smov [#allocation2]  }
   0xf   : > { %s199_s11 = sshll.u32 %s3186_s10, 4  ;;  %p3046_p11 = pneg %p3276_p10  ;;  %s200_s11 = int_to_ptr.vmem [resolvable:$true] %s199_s11 }
  0x10   : > { %s3105_s12 = scalar_lea.vmem %s200_s11, 20480  ;;  %p3113_p3 = scmp.lt.s32.totalorder %s200_s11, %s200_s11 }
  0x11   : > { %p3047_p12 = pnand %p3054_p9, %p3046_p11  ;;  %p3106_p0 = scmp.ne.s32.totalorder %s200_s11, %s3105_s12 }
  0x12   : > { %p3114_p4 = scmp.lt.s32.totalorder %s3105_s12, %s3105_s12 }
  0x13   : > { %p3096_p13 = pneg %p3047_p12 }
  0x14   : > { %p3115_p6 = por %p3114_p4, %p3113_p3 }
  0x15   : > { %p3108_p1 = pnand %p3106_p0, %p3096_p13 }
  0x17   : > { %p3109_p2 = pneg %p3108_p1 }
  0x19   : > { %p3116_p7 = pnand %p3115_p6, %p3109_p2 }
  0x1b   : > { %3119 = shalt.err (!%p3116_p7)
}
  0x1c   : > { %s3187_s13 = smov 512   ;;  %s3188_s14 = smov 32  }
  0x1d   : > { %3049 = dma.hbm_to_vmem [thread:$0]  (!%p3047_p12), %s4531_s2, 20480, %s200_s11, [#allocation3], %s3187_s13, %s3187_s13, %s3188_s14  }
  0x1e   : > { %239 = sbr.rel (%p3276_p10) target bundleno = 783 (0x30f), region = 44 }
  0x23   : > { %3163 = dma.done.wait (%p3054_p9), [#allocation3], 20480  }
  0x24   : > { %3165 = vsyncadd (%p3054_p9), [#allocation3], 4294946816  ;;  %p273_p8 = scmp.lt.s32.totalorder %s3248_s25, 1  ;;  %v3189_v0 = vmov 0.0   ;;  %v300_v1 = vld [vmem:[%s4532_s3 + $0x68] sm:$0xff]  ;;  %v302_v2 = vld [vmem:[%s4532_s3 + $0x78] sm:$0xff] }
  0x25   : > { %371 = vmatprep.mubr.f32.mxu0 %v3189_v0  ;;  %442 = vmatprep.mubr.f32.mxu1 %v3189_v0  ;;  %v299_v3 = vld [vmem:[%s4532_s3 + $0x60] sm:$0xff]  ;;  %v301_v4 = vld [vmem:[%s4532_s3 + $0x70] sm:$0xff]  ;;  %v296_v5 = vld [vmem:[%s4532_s3 + $0x48] sm:$0xff]  ;;  %vm303_vm0 = vcmask 261120   ;;  %v4536_v46 = vmov 0   ;;  %vm1437_vm1 = vcmask 523264  }
  0x26   : > { %s274_s17 = scalar_select %p273_p8, %s3248_s25, 1  ;;  %331 = vmatprep.subr.mxu0 %v300_v1  ;;  %402 = vmatprep.subr.mxu1 %v302_v2  ;;  %v298_v6 = vld [vmem:[%s4532_s3 + $0x58] sm:$0xff]  ;;  %v295_v7 = vld [vmem:[%s4532_s3 + $0x40] sm:$0xff]  ;;  %v297_v8 = vld [vmem:[%s4532_s3 + $0x50] sm:$0xff]  ;;  %vm2521_vm2 = vcmask 130048  }
  0x27   : > { %332 = vmatpush1.msra.mxu0 %v299_v3  ;;  %403 = vmatpush1.msra.mxu1 %v301_v4  ;;  %v292_v9 = vld [vmem:[%s4532_s3 + $0x28] sm:$0xff]  ;;  %v294_v10 = vld [vmem:[%s4532_s3 + $0x38] sm:$0xff]  ;;  %v291_v11 = vld [vmem:[%s4532_s3 + $0x20] sm:$0xff]  ;;  %s270_s20 = sand.u32 1, %s3176_s22   ;;  %s2896_s28 = sshll.u32 %s3248_s25, 7 }
  0x28   : > { %s3039_s18 = smul.u32 24, %s274_s17  ;;  %s2627_s19 = sshll.u32 %s274_s17, 3  ;;  %333 = vmatprep.subr.mxu0 %v296_v5  ;;  %404 = vmatprep.subr.mxu1 %v298_v6  ;;  %v293_v12 = vld [vmem:[%s4532_s3 + $0x30] sm:$0xff]  ;;  %v288_v13 = vld [vmem:[%s4532_s3 + $0x8] sm:$0xff]  ;;  %v290_v14 = vld [vmem:[%s4532_s3 + $0x18] sm:$0xff] }
  0x29   : > { %s276_s12 = scalar_lea.vmem %s4529_s0, %s2627_s19  ;;  %334 = vmatpush1.msra.mxu0 %v295_v7  ;;  %405 = vmatpush1.msra.mxu1 %v297_v8  ;;  %v287_v15 = vld [vmem:[%s4532_s3] sm:$0xff]  ;;  %v289_v16 = vld [vmem:[%s4532_s3 + $0x10] sm:$0xff]  ;;  %v534_v54 = vld [vmem:[#allocation2 + $0x1c8] sm:$0xff]  ;;  %s2626_s26 = sshll.u32 %s270_s20, 3 }
  0x2a   : > { %s3328_s15 = scalar_lea.vmem %s4530_s1, %s3039_s18  ;;  %335 = vmatprep.subr.mxu0 %v292_v9  ;;  %406 = vmatprep.subr.mxu1 %v294_v10  ;;  %v283_v17 = vld [vmem:[%s276_s12] sm:$0xff]  ;;  %v538_v55 = vld [vmem:[#allocation2 + $0x1e8] sm:$0xff]  ;;  %s272_s29 = scalar_lea.vmem [#allocation5], %s2626_s26 }
  0x2b   : > { %v286_v18 = vld [vmem:[%s3328_s15 + $0x10] sm:$0xff]  ;;  %336 = vmatpush1.msra.mxu0 %v291_v11  ;;  %407 = vmatpush1.msra.mxu1 %v293_v12  ;;  %v533_v19 = vld [vmem:[#allocation2 + $0x1c0] sm:$0xff]  ;;  %v3406_v60 = vcombine.high %v534_v54, %v538_v55  ;;  %v526_v63 = vld [vmem:[#allocation2 + $0x188] sm:$0xff]  ;;  %v3414_v3 = vcombine.low %v534_v54, %v538_v55  ;;  %s2537_s19 = sshll.u32 %s272_s29, 4  ;;  %s2535_s10 = scalar_lea.hbm %s4535_s6, %s2896_s28  ;;  %s2538_s19 = int_to_ptr.vmem [resolvable:$true] %s2537_s19 }
  0x2c   : > { %v537_v20 = vld [vmem:[#allocation2 + $0x1e0] sm:$0xff]  ;;  %337 = vmatprep.subr.mxu0 %v288_v13  ;;  %408 = vmatprep.subr.mxu1 %v290_v14  ;;  %v3366_v37 = vpack.c.bf16 %v286_v18, %v286_v18  ;;  %v530_v0 = vld [vmem:[#allocation2 + $0x1a8] sm:$0xff]  ;;  %s2524_s11 = scalar_lea.sflag [#allocation4], %s270_s20  ;;  %s3120_s13 = scalar_lea.vmem %s2538_s19, 128 }
  0x2d   : > { %v629_v21 = vld [vmem:[#allocation2 + $0x4c0] sm:$0xff]  ;;  %v3352_v22 = vcombine.low %v533_v19, %v537_v20  ;;  %v3354_v23 = vcombine.high %v533_v19, %v537_v20  ;;  %338 = vmatpush1.msra.mxu0 %v287_v15  ;;  %409 = vmatpush1.msra.mxu1 %v289_v16  ;;  %v3420_v5 = vcombine.high %v526_v63, %v530_v0  ;;  %v518_v8 = vld [vmem:[#allocation2 + $0x148] sm:$0xff]  ;;  %p3121_p6 = scmp.ne.s32.totalorder %s2538_s19, %s3120_s13  ;;  %s3191_s14 = smov [#allocation5]  }
  0x2e   : > { %v633_v24 = vld [vmem:[#allocation2 + $0x4e0] sm:$0xff]  ;;  %2629 = vmatmul.mubr.msk.f32.vlgmr.msra.gmra.mxu0 %vm303_vm0, %v283_v17  ;;  %2630 = vmatmul.mubr.msk.f32.vlgmr.msra.gmra.mxu1 %vm303_vm0, %v283_v17  ;;  %v470_v47 = vunpack.c.l.bf16 %v3366_v37  ;;  %v522_v9 = vld [vmem:[#allocation2 + $0x168] sm:$0xff]  ;;  %v3428_v11 = vcombine.low %v526_v63, %v530_v0  ;;  %s3124_s25 = sshll.u32 %s3191_s14, 4  ;;  %s3125_s25 = int_to_ptr.vmem [resolvable:$false] %s3124_s25 }
  0x2f   : > { %v525_v25 = vld [vmem:[#allocation2 + $0x180] sm:$0xff]  ;;  %v3356_v27 = vcombine.low %v629_v21, %v633_v24  ;;  %v3358_v28 = vcombine.high %v629_v21, %v633_v24  ;;  %1441 = vmatprep.subr.bf16.mxu0 %v3354_v23  ;;  %1514 = vmatprep.mubr.bf16.mxu1 %v4536_v46  ;;  %v285_v12 = vld [vmem:[%s3328_s15 + $0x8] sm:$0xff]  ;;  %v3435_v14 = vcombine.high %v518_v8, %v522_v9  ;;  %p3122_p9 = pnand %p3121_p6, %p3265_p5  ;;  %s3126_s16 = scalar_lea.vmem %s3125_s25, 256 }
  0x30   : > { %v529_v26 = vld [vmem:[#allocation2 + $0x1a0] sm:$0xff]  ;;  %1442 = vmatpush1.bf16.msra.mxu0 %v3352_v22  ;;  %v473_v56 = vsub.f32 %v286_v18, %v470_v47  ;;  %v3437_v16 = vpack.c.bf16 %v285_v12, %v285_v12  ;;  %v510_v18 = vld [vmem:[#allocation2 + $0x108] sm:$0xff]  ;;  %v3444_v24 = vcombine.low %v518_v8, %v522_v9  ;;  %p3127_p11 = scmp.lt.s32.totalorder %s2538_s19, %s3125_s25  ;;  %p3128_p12 = scmp.lt.s32.totalorder %s3126_s16, %s3120_s13 }
  0x31   : > { %v621_v29 = vld [vmem:[#allocation2 + $0x480] sm:$0xff]  ;;  %v3362_v32 = vcombine.high %v525_v25, %v529_v26  ;;  %1490 = vmatprep.subr.bf16.mxu1 %v3358_v28  ;;  %v3372_v38 = vcombine.low %v525_v25, %v529_v26  ;;  %v514_v19 = vld [vmem:[#allocation2 + $0x128] sm:$0xff]  ;;  %p3123_p10 = pneg %p3122_p9 }
  0x32   : > { %v625_v30 = vld [vmem:[#allocation2 + $0x4a0] sm:$0xff]  ;;  %1491 = vmatpush1.bf16.msra.mxu1 %v3356_v27  ;;  %v3408_v1 = vpack.c.bf16 %v473_v56, %v473_v56  ;;  %v469_v20 = vunpack.c.l.bf16 %v3437_v16  ;;  %v3450_v26 = vcombine.high %v510_v18, %v514_v19  ;;  %v498_v54 = vld [vmem:[#allocation2 + $0xa8] sm:$0xff]  ;;  %p3129_p13 = por %p3128_p12, %p3127_p11 }
  0x33   : > { %v517_v31 = vld [vmem:[#allocation2 + $0x140] sm:$0xff]  ;;  %v3364_v33 = vcombine.high %v621_v29, %v625_v30  ;;  %v3374_v39 = vcombine.low %v621_v29, %v625_v30  ;;  %1443 = vmatprep.subr.bf16.mxu0 %v3362_v32 }
  0x34   : > { %v521_v34 = vld [vmem:[#allocation2 + $0x160] sm:$0xff]  ;;  %1444 = vmatpush1.bf16.msra.mxu0 %v3372_v38  ;;  %v472_v30 = vsub.f32 %v285_v12, %v469_v20  ;;  %v482_v20 = vld [vmem:[#allocation2 + $0x28] sm:$0xff]  ;;  %p3130_p0 = pnand %p3129_p13, %p3123_p10 }
  0x35   : > { %v613_v35 = vld [vmem:[#allocation2 + $0x440] sm:$0xff]  ;;  %1492 = vmatprep.subr.bf16.mxu1 %v3364_v33  ;;  %v3378_v40 = vcombine.high %v517_v31, %v521_v34  ;;  %v3386_v48 = vcombine.low %v517_v31, %v521_v34  ;;  %v502_v34 = vld [vmem:[#allocation2 + $0xc8] sm:$0xff] }
  0x36   : > { %v617_v36 = vld [vmem:[#allocation2 + $0x460] sm:$0xff]  ;;  %1493 = vmatpush1.bf16.msra.mxu1 %v3374_v39 }
  0x37   : > { %v3380_v41 = vcombine.high %v613_v35, %v617_v36  ;;  %v509_v42 = vld [vmem:[#allocation2 + $0x100] sm:$0xff]  ;;  %v3388_v49 = vcombine.low %v613_v35, %v617_v36  ;;  %1445 = vmatprep.subr.bf16.mxu0 %v3378_v40  ;;  %v506_v35 = vld [vmem:[#allocation2 + $0xe8] sm:$0xff]  ;;  %v3452_v36 = vpack.c.bf16 %v472_v30, %v472_v30 }
  0x38   : > { %v513_v43 = vld [vmem:[#allocation2 + $0x120] sm:$0xff]  ;;  %1446 = vmatpush1.bf16.msra.mxu0 %v3386_v48  ;;  %v3472_v56 = vcombine.low %v502_v34, %v506_v35 }
  0x39   : > { %v605_v44 = vld [vmem:[#allocation2 + $0x400] sm:$0xff]  ;;  %1494 = vmatprep.subr.bf16.mxu1 %v3380_v41  ;;  %v3392_v50 = vcombine.high %v509_v42, %v513_v43  ;;  %v3398_v57 = vcombine.low %v509_v42, %v513_v43  ;;  %v3458_v43 = vcombine.low %v510_v18, %v514_v19  ;;  %1473 = vmatprep.mubr.bf16.mxu0 %v3452_v36  ;;  %v478_v19 = vld [vmem:[#allocation2 + $0x8] sm:$0xff] }
  0x3a   : > { %v609_v45 = vld [vmem:[#allocation2 + $0x420] sm:$0xff]  ;;  %1495 = vmatpush1.bf16.msra.mxu1 %v3388_v49 }
  0x3b   : > { %v3394_v51 = vcombine.high %v605_v44, %v609_v45  ;;  %v501_v52 = vld [vmem:[#allocation2 + $0xc0] sm:$0xff]  ;;  %v3400_v58 = vcombine.low %v605_v44, %v609_v45  ;;  %1447 = vmatprep.subr.bf16.mxu0 %v3392_v50  ;;  %v3464_v45 = vcombine.high %v502_v34, %v506_v35  ;;  %v3502_v34 = vcombine.high %v478_v19, %v482_v20 }
  0x3c   : > { %v505_v53 = vld [vmem:[#allocation2 + $0xe0] sm:$0xff]  ;;  %1448 = vmatpush1.bf16.msra.mxu0 %v3398_v57 }
  0x3d   : > { %1496 = vmatprep.subr.bf16.mxu1 %v3394_v51  ;;  %v3404_v59 = vcombine.high %v501_v52, %v505_v53  ;;  %v493_v61 = vld [vmem:[#allocation2 + $0x80] sm:$0xff]  ;;  %v3412_v2 = vcombine.low %v501_v52, %v505_v53  ;;  %v494_v53 = vld [vmem:[#allocation2 + $0x88] sm:$0xff]  ;;  %4660 = vst [vmem:[#allocation16_spill] sm:$0xff] %v3502_v34 }
  0x3e   : > { %v497_v62 = vld [vmem:[#allocation2 + $0xa0] sm:$0xff]  ;;  %1497 = vmatpush1.bf16.msra.mxu1 %v3400_v58  ;;  %v3484_v9 = vcombine.low %v494_v53, %v498_v54 }
  0x3f   : > { %1449 = vmatprep.subr.bf16.mxu0 %v3404_v59  ;;  %1523 = vmatprep.subr.bf16.mxu1 %v3406_v60  ;;  %v3418_v4 = vcombine.high %v493_v61, %v497_v62  ;;  %v485_v6 = vld [vmem:[#allocation2 + $0x40] sm:$0xff]  ;;  %v3426_v10 = vcombine.low %v493_v61, %v497_v62  ;;  %v3478_v62 = vcombine.high %v494_v53, %v498_v54  ;;  %v602_v53 = vld [vmem:[#allocation2 + $0x3e8] sm:$0xff] }
  0x40   : > { %v489_v7 = vld [vmem:[#allocation2 + $0x60] sm:$0xff]  ;;  %1450 = vmatpush1.bf16.msra.mxu0 %v3412_v2  ;;  %4654 = vst [vmem:[#allocation10_spill] sm:$0xff] %v3484_v9 }
  0x41   : > { %2791 = vmatmul.mubr.msk.bf16.vlgmr.msra.gmra.mxu1 %vm1437_vm1, %v3408_v1  ;;  %1451 = vmatprep.subr.bf16.mxu0 %v3418_v4  ;;  %v3433_v13 = vcombine.high %v485_v6, %v489_v7  ;;  %v477_v15 = vld [vmem:[#allocation2] sm:$0xff]  ;;  %v3442_v21 = vcombine.low %v485_v6, %v489_v7  ;;  %4652 = vst [vmem:[#allocation8_spill] sm:$0xff] %v3478_v62  ;;  %v486_v6 = vld [vmem:[#allocation2 + $0x48] sm:$0xff] }
  0x42   : > { %1524 = vmatpush1.bf16.msra.mxu1 %v3414_v3  ;;  %v481_v17 = vld [vmem:[#allocation2 + $0x20] sm:$0xff]  ;;  %1555 = vmatprep.mubr.bf16.mxu1 %v3452_v36  ;;  %v490_v7 = vld [vmem:[#allocation2 + $0x68] sm:$0xff] }
  0x43   : > { %1525 = vmatprep.subr.bf16.mxu1 %v3420_v5  ;;  %v3448_v25 = vcombine.high %v477_v15, %v481_v17  ;;  %v597_v29 = vld [vmem:[#allocation2 + $0x3c0] sm:$0xff]  ;;  %v3456_v42 = vcombine.low %v477_v15, %v481_v17  ;;  %v3490_v15 = vcombine.high %v486_v6, %v490_v7  ;;  %v3496_v30 = vcombine.low %v486_v6, %v490_v7 }
  0x44   : > { %1452 = vmatpush1.bf16.msra.mxu0 %v3426_v10  ;;  %v601_v31 = vld [vmem:[#allocation2 + $0x3e0] sm:$0xff] }
  0x45   : > { %1453 = vmatprep.subr.bf16.mxu0 %v3433_v13  ;;  %v3462_v44 = vcombine.high %v597_v29, %v601_v31  ;;  %v589_v47 = vld [vmem:[#allocation2 + $0x380] sm:$0xff]  ;;  %v3470_v55 = vcombine.low %v597_v29, %v601_v31  ;;  %4656 = vst [vmem:[#allocation12_spill] sm:$0xff] %v3490_v15  ;;  %4658 = vst [vmem:[#allocation14_spill] sm:$0xff] %v3496_v30 }
  0x46   : > { %1526 = vmatpush1.bf16.msra.mxu1 %v3428_v11  ;;  %v593_v52 = vld [vmem:[#allocation2 + $0x3a0] sm:$0xff] }
  0x47   : > { %1527 = vmatprep.subr.bf16.mxu1 %v3435_v14  ;;  %v3476_v61 = vcombine.high %v589_v47, %v593_v52  ;;  %v581_v63 = vld [vmem:[#allocation2 + $0x340] sm:$0xff]  ;;  %v3482_v8 = vcombine.low %v589_v47, %v593_v52  ;;  %v598_v52 = vld [vmem:[#allocation2 + $0x3c8] sm:$0xff] }
  0x48   : > { %1454 = vmatpush1.bf16.msra.mxu0 %v3442_v21  ;;  %v585_v0 = vld [vmem:[#allocation2 + $0x360] sm:$0xff]  ;;  %v3514_v6 = vcombine.high %v598_v52, %v602_v53 }
  0x49   : > { %1455 = vmatprep.subr.bf16.mxu0 %v3448_v25  ;;  %4653 = vst [vmem:[#allocation9_spill] sm:$0xff] %v3482_v8  ;;  %v3488_v12 = vcombine.high %v581_v63, %v585_v0  ;;  %v573_v17 = vld [vmem:[#allocation2 + $0x300] sm:$0xff]  ;;  %v3494_v29 = vcombine.low %v581_v63, %v585_v0  ;;  %v3508_v63 = vcombine.low %v478_v19, %v482_v20 }
  0x4a   : > { %1528 = vmatpush1.bf16.msra.mxu1 %v3444_v24  ;;  %v577_v18 = vld [vmem:[#allocation2 + $0x320] sm:$0xff]  ;;  %4664 = vst [vmem:[#allocation20_spill] sm:$0xff] %v3514_v6 }
  0x4b   : > { %1529 = vmatprep.subr.bf16.mxu1 %v3450_v26  ;;  %4655 = vst [vmem:[#allocation11_spill] sm:$0xff] %v3488_v12  ;;  %4657 = vst [vmem:[#allocation13_spill] sm:$0xff] %v3494_v29  ;;  %v3500_v31 = vcombine.high %v573_v17, %v577_v18  ;;  %v565_v35 = vld [vmem:[#allocation2 + $0x2c0] sm:$0xff]  ;;  %v3506_v54 = vcombine.low %v573_v17, %v577_v18  ;;  %v3520_v18 = vcombine.low %v598_v52, %v602_v53 }
  0x4c   : > { %1456 = vmatpush1.bf16.msra.mxu0 %v3456_v42  ;;  %v569_v47 = vld [vmem:[#allocation2 + $0x2e0] sm:$0xff]  ;;  %4662 = vst [vmem:[#allocation18_spill] sm:$0xff] %v3508_v63 }
  0x4d   : > { %1457 = vmatprep.subr.bf16.mxu0 %v3462_v44  ;;  %4659 = vst [vmem:[#allocation15_spill] sm:$0xff] %v3500_v31  ;;  %4661 = vst [vmem:[#allocation17_spill] sm:$0xff] %v3506_v54  ;;  %v3512_v0 = vcombine.high %v565_v35, %v569_v47  ;;  %v557_v7 = vld [vmem:[#allocation2 + $0x280] sm:$0xff]  ;;  %v3518_v17 = vcombine.low %v565_v35, %v569_v47 }
  0x4e   : > { %1530 = vmatpush1.bf16.msra.mxu1 %v3458_v43  ;;  %v561_v46 = vld [vmem:[#allocation2 + $0x2a0] sm:$0xff]  ;;  %4666 = vst [vmem:[#allocation22_spill] sm:$0xff] %v3520_v18 }
  0x4f   : > { %1531 = vmatprep.subr.bf16.mxu1 %v3464_v45  ;;  %4663 = vst [vmem:[#allocation19_spill] sm:$0xff] %v3512_v0  ;;  %4665 = vst [vmem:[#allocation21_spill] sm:$0xff] %v3518_v17  ;;  %v284_v19 = vld [vmem:[%s3328_s15] sm:$0xff]  ;;  %v3525_v20 = vcombine.high %v557_v7, %v561_v46  ;;  %v3533_v35 = vcombine.low %v557_v7, %v561_v46 }
  0x50   : > { %1458 = vmatpush2.bf16.msra.mxu0 %v3470_v55 }
  0x51   : > { %1459 = vmatprep.subr.bf16.mxu0 %v3476_v61  ;;  %4667 = vst [vmem:[#allocation23_spill] sm:$0xff] %v3525_v20 }
  0x52   : > { %1532 = vmatpush1.bf16.msra.mxu1 %v3472_v56 }
  0x53   : > { %1533 = vmatprep.subr.bf16.mxu1 %v3478_v62 }
  0x54   : > { %1460 = vmatpush2.bf16.msra.mxu0 %v3482_v8  ;;  %v578_v8 = vld [vmem:[#allocation2 + $0x328] sm:$0xff] }
  0x55   : > { %1461 = vmatprep.subr.bf16.mxu0 %v3488_v12  ;;  %v594_v12 = vld [vmem:[#allocation2 + $0x3a8] sm:$0xff] }
  0x56   : > { %1534 = vmatpush1.bf16.msra.mxu1 %v3484_v9  ;;  %v586_v9 = vld [vmem:[#allocation2 + $0x368] sm:$0xff] }
  0x57   : > { %1535 = vmatprep.subr.bf16.mxu1 %v3490_v15  ;;  %v590_v15 = vld [vmem:[#allocation2 + $0x388] sm:$0xff] }
  0x58   : > { %1462 = vmatpush2.bf16.msra.mxu0 %v3494_v29  ;;  %v582_v29 = vld [vmem:[#allocation2 + $0x348] sm:$0xff]  ;;  %v3535_v47 = vcombine.low %v590_v15, %v594_v12 }
  0x59   : > { %1463 = vmatprep.subr.bf16.mxu0 %v3500_v31  ;;  %v549_v31 = vld [vmem:[#allocation2 + $0x240] sm:$0xff]  ;;  %v3541_v53 = vcombine.high %v582_v29, %v586_v9 }
  0x5a   : > { %1536 = vmatpush1.bf16.msra.mxu1 %v3496_v30  ;;  %v553_v30 = vld [vmem:[#allocation2 + $0x260] sm:$0xff]  ;;  %4670 = vst [vmem:[#allocation26_spill] sm:$0xff] %v3535_v47 }
  0x5b   : > { %1537 = vmatprep.subr.bf16.mxu1 %v3502_v34  ;;  %v3527_v34 = vcombine.high %v590_v15, %v594_v12  ;;  %v3539_v52 = vcombine.high %v549_v31, %v553_v30  ;;  %4672 = vst [vmem:[#allocation28_spill] sm:$0xff] %v3541_v53  ;;  %v3546_v46 = vcombine.low %v549_v31, %v553_v30 }
  0x5c   : > { %1464 = vmatpush2.bf16.msra.mxu0 %v3506_v54  ;;  %v3529_v54 = vpack.c.bf16 %v284_v19, %v284_v19  ;;  %v3548_v12 = vcombine.low %v582_v29, %v586_v9 }
  0x5d   : > { %1465 = vmatprep.subr.bf16.mxu0 %v3512_v0  ;;  %4668 = vst [vmem:[#allocation24_spill] sm:$0xff] %v3527_v34  ;;  %4671 = vst [vmem:[#allocation27_spill] sm:$0xff] %v3539_v52  ;;  %v545_v0 = vld [vmem:[#allocation2 + $0x220] sm:$0xff] }
  0x5e   : > { %1538 = vmatpush1.bf16.msra.mxu1 %v3508_v63  ;;  %4669 = vst [vmem:[#allocation25_spill] sm:$0xff] %v3529_v54  ;;  %v574_v63 = vld [vmem:[#allocation2 + $0x308] sm:$0xff]  ;;  %4673 = vst [vmem:[#allocation29_spill] sm:$0xff] %v3546_v46 }
  0x5f   : > { %1539 = vmatprep.subr.bf16.mxu1 %v3514_v6  ;;  %v541_v6 = vld [vmem:[#allocation2 + $0x200] sm:$0xff]  ;;  %4674 = vst [vmem:[#allocation30_spill] sm:$0xff] %v3548_v12  ;;  %v3554_v7 = vcombine.high %v574_v63, %v578_v8  ;;  %v3560_v9 = vcombine.low %v574_v63, %v578_v8 }
  0x60   : > { %1466 = vmatpush2.bf16.msra.mxu0 %v3518_v17  ;;  %v468_v17 = vunpack.c.l.bf16 %v3529_v54  ;;  %v3552_v15 = vcombine.high %v541_v6, %v545_v0  ;;  %v634_v54 = vld [vmem:[#allocation2 + $0x4e8] sm:$0xff]  ;;  %v3558_v30 = vcombine.low %v541_v6, %v545_v0 }
  0x61   : > { %1467 = vmatprep.subr.bf16.mxu0 %v3525_v20  ;;  %4676 = vst [vmem:[#allocation32_spill] sm:$0xff] %v3554_v7  ;;  %v570_v20 = vld [vmem:[#allocation2 + $0x2e8] sm:$0xff]  ;;  %4678 = vst [vmem:[#allocation34_spill] sm:$0xff] %v3560_v9 }
  0x62   : > { %1540 = vmatpush2.bf16.msra.mxu1 %v3520_v18  ;;  %4675 = vst [vmem:[#allocation31_spill] sm:$0xff] %v3552_v15  ;;  %v630_v18 = vld [vmem:[#allocation2 + $0x4c8] sm:$0xff]  ;;  %v471_v62 = vsub.f32 %v284_v19, %v468_v17  ;;  %4677 = vst [vmem:[#allocation33_spill] sm:$0xff] %v3558_v30 }
  0x63   : > { %1541 = vmatprep.subr.bf16.mxu1 %v3527_v34  ;;  %v566_v34 = vld [vmem:[#allocation2 + $0x2c8] sm:$0xff]  ;;  %v3566_v31 = vcombine.high %v630_v18, %v634_v54  ;;  %v3574_v63 = vcombine.low %v630_v18, %v634_v54 }
  0x64   : > { %1468 = vmatpush2.bf16.msra.mxu0 %v3533_v35  ;;  %v3564_v29 = vcombine.high %v566_v34, %v570_v20  ;;  %v626_v17 = vld [vmem:[#allocation2 + $0x4a8] sm:$0xff]  ;;  %v3568_v19 = vpack.c.bf16 %v471_v62, %v471_v62  ;;  %v3572_v8 = vcombine.low %v566_v34, %v570_v20 }
  0x65   : > { %1469 = vmatprep.subr.bf16.mxu0 %v3539_v52  ;;  %4680 = vst [vmem:[#allocation36_spill] sm:$0xff] %v3566_v31  ;;  %v562_v52 = vld [vmem:[#allocation2 + $0x2a8] sm:$0xff]  ;;  %4682 = vst [vmem:[#allocation38_spill] sm:$0xff] %v3574_v63 }
  0x66   : > { %1542 = vmatpush2.bf16.msra.mxu1 %v3535_v47  ;;  %4679 = vst [vmem:[#allocation35_spill] sm:$0xff] %v3564_v29  ;;  %v622_v47 = vld [vmem:[#allocation2 + $0x488] sm:$0xff]  ;;  %4681 = vst [vmem:[#allocation37_spill] sm:$0xff] %v3572_v8 }
  0x67   : > { %1543 = vmatprep.subr.bf16.mxu1 %v3541_v53  ;;  %v558_v53 = vld [vmem:[#allocation2 + $0x288] sm:$0xff]  ;;  %v3580_v6 = vcombine.high %v622_v47, %v626_v17  ;;  %v3587_v54 = vcombine.low %v622_v47, %v626_v17 }
  0x68   : > { %1470 = vmatpush2.bf16.msra.mxu0 %v3546_v46  ;;  %v3578_v0 = vcombine.high %v558_v53, %v562_v52  ;;  %v614_v62 = vld [vmem:[#allocation2 + $0x448] sm:$0xff]  ;;  %v3585_v34 = vcombine.low %v558_v53, %v562_v52  ;;  %v4689_v46 = vmov 0  }
  0x69   : > { %1471 = vmatprep.subr.bf16.mxu0 %v3552_v15  ;;  %4684 = vst [vmem:[#allocation40_spill] sm:$0xff] %v3580_v6  ;;  %v554_v15 = vld [vmem:[#allocation2 + $0x268] sm:$0xff]  ;;  %4686 = vst [vmem:[#allocation42_spill] sm:$0xff] %v3587_v54 }
  0x6a   : > { %1544 = vmatpush2.bf16.msra.mxu1 %v3548_v12  ;;  %4683 = vst [vmem:[#allocation39_spill] sm:$0xff] %v3578_v0  ;;  %v618_v12 = vld [vmem:[#allocation2 + $0x468] sm:$0xff]  ;;  %4685 = vst [vmem:[#allocation41_spill] sm:$0xff] %v3585_v34 }
  0x6b   : > { %1545 = vmatprep.subr.bf16.mxu1 %v3554_v7  ;;  %v550_v7 = vld [vmem:[#allocation2 + $0x248] sm:$0xff]  ;;  %v3593_v20 = vcombine.high %v614_v62, %v618_v12  ;;  %v3600_v52 = vcombine.low %v614_v62, %v618_v12 }
  0x6c   : > { %1472 = vmatpush2.bf16.msra.mxu0 %v3558_v30  ;;  %v3591_v18 = vcombine.high %v550_v7, %v554_v15  ;;  %v610_v30 = vld [vmem:[#allocation2 + $0x428] sm:$0xff]  ;;  %v3598_v47 = vcombine.low %v550_v7, %v554_v15 }
  0x6d   : > { %1572 = vmatprep.subr.bf16.mxu0 %v3566_v31  ;;  %4688 = vst [vmem:[#allocation44_spill] sm:$0xff] %v3593_v20  ;;  %v542_v31 = vld [vmem:[#allocation2 + $0x208] sm:$0xff]  ;;  %4691 = vst [vmem:[#allocation46_spill] sm:$0xff] %v3600_v52 }
  0x6e   : > { %1546 = vmatpush2.bf16.msra.mxu1 %v3560_v9  ;;  %4687 = vst [vmem:[#allocation43_spill] sm:$0xff] %v3591_v18  ;;  %v606_v9 = vld [vmem:[#allocation2 + $0x408] sm:$0xff]  ;;  %4690 = vst [vmem:[#allocation45_spill] sm:$0xff] %v3598_v47 }
  0x6f   : > { %1547 = vmatprep.subr.bf16.mxu1 %v3564_v29  ;;  %1474 = vmatmul.mubr.bf16.vlgmr.msra.gmra.mxu0 %v3568_v19  ;;  %v546_v29 = vld [vmem:[#allocation2 + $0x228] sm:$0xff]  ;;  %v3606_v17 = vcombine.high %v606_v9, %v610_v30  ;;  %v3612_v12 = vcombine.low %v606_v9, %v610_v30 }
  0x70   : > { %1573 = vmatpush1.bf16.msra.mxu0 %v3574_v63  ;;  %1596 = vmatprep.mubr.bf16.mxu0 %v4689_v46  ;;  %v3604_v53 = vcombine.high %v542_v31, %v546_v29  ;;  %v631_v63 = vld [vmem:[#allocation2 + $0x4d0] sm:$0xff]  ;;  %v3610_v15 = vcombine.low %v542_v31, %v546_v29 }
  0x71   : > { %1574 = vmatprep.subr.bf16.mxu0 %v3580_v6  ;;  %4693 = vst [vmem:[#allocation48_spill] sm:$0xff] %v3606_v17  ;;  %v535_v6 = vld [vmem:[#allocation2 + $0x1d0] sm:$0xff]  ;;  %4695 = vst [vmem:[#allocation50_spill] sm:$0xff] %v3612_v12 }
  0x72   : > { %1548 = vmatpush2.bf16.msra.mxu1 %v3572_v8  ;;  %4692 = vst [vmem:[#allocation47_spill] sm:$0xff] %v3604_v53  ;;  %v635_v8 = vld [vmem:[#allocation2 + $0x4f0] sm:$0xff]  ;;  %4694 = vst [vmem:[#allocation49_spill] sm:$0xff] %v3610_v15 }
  0x73   : > { %1549 = vmatprep.subr.bf16.mxu1 %v3578_v0  ;;  %v539_v0 = vld [vmem:[#allocation2 + $0x1f0] sm:$0xff]  ;;  %v3618_v62 = vcombine.high %v631_v63, %v635_v8  ;;  %v3624_v30 = vcombine.low %v631_v63, %v635_v8 }
  0x74   : > { %1575 = vmatpush1.bf16.msra.mxu0 %v3587_v54  ;;  %v3616_v7 = vcombine.high %v535_v6, %v539_v0  ;;  %v623_v54 = vld [vmem:[#allocation2 + $0x490] sm:$0xff]  ;;  %v3622_v29 = vcombine.low %v535_v6, %v539_v0 }
  0x75   : > { %1576 = vmatprep.subr.bf16.mxu0 %v3593_v20  ;;  %4697 = vst [vmem:[#allocation52_spill] sm:$0xff] %v3618_v62  ;;  %v527_v20 = vld [vmem:[#allocation2 + $0x190] sm:$0xff]  ;;  %4699 = vst [vmem:[#allocation54_spill] sm:$0xff] %v3624_v30 }
  0x76   : > { %1550 = vmatpush2.bf16.msra.mxu1 %v3585_v34  ;;  %4696 = vst [vmem:[#allocation51_spill] sm:$0xff] %v3616_v7  ;;  %v627_v34 = vld [vmem:[#allocation2 + $0x4b0] sm:$0xff]  ;;  %4698 = vst [vmem:[#allocation53_spill] sm:$0xff] %v3622_v29 }
  0x77   : > { %1551 = vmatprep.subr.bf16.mxu1 %v3591_v18  ;;  %v531_v18 = vld [vmem:[#allocation2 + $0x1b0] sm:$0xff]  ;;  %v3630_v31 = vcombine.high %v623_v54, %v627_v34  ;;  %v3639_v63 = vcombine.low %v623_v54, %v627_v34 }
  0x78   : > { %1577 = vmatpush1.bf16.msra.mxu0 %v3600_v52  ;;  %v3628_v9 = vcombine.high %v527_v20, %v531_v18  ;;  %v615_v52 = vld [vmem:[#allocation2 + $0x450] sm:$0xff]  ;;  %v3637_v8 = vcombine.low %v527_v20, %v531_v18 }
  0x79   : > { %1578 = vmatprep.subr.bf16.mxu0 %v3606_v17  ;;  %4701 = vst [vmem:[#allocation56_spill] sm:$0xff] %v3630_v31  ;;  %v519_v17 = vld [vmem:[#allocation2 + $0x150] sm:$0xff]  ;;  %4703 = vst [vmem:[#allocation58_spill] sm:$0xff] %v3639_v63 }
  0x7a   : > { %1552 = vmatpush2.bf16.msra.mxu1 %v3598_v47  ;;  %4700 = vst [vmem:[#allocation55_spill] sm:$0xff] %v3628_v9  ;;  %v619_v47 = vld [vmem:[#allocation2 + $0x470] sm:$0xff]  ;;  %4702 = vst [vmem:[#allocation57_spill] sm:$0xff] %v3637_v8 }
  0x7b   : > { %1553 = vmatprep.subr.bf16.mxu1 %v3604_v53  ;;  %v523_v53 = vld [vmem:[#allocation2 + $0x170] sm:$0xff]  ;;  %v3645_v6 = vcombine.high %v615_v52, %v619_v47  ;;  %v3653_v54 = vcombine.low %v615_v52, %v619_v47 }
  0x7c   : > { %1579 = vmatpush1.bf16.msra.mxu0 %v3612_v12  ;;  %v3643_v0 = vcombine.high %v519_v17, %v523_v53  ;;  %v607_v12 = vld [vmem:[#allocation2 + $0x410] sm:$0xff]  ;;  %v3651_v34 = vcombine.low %v519_v17, %v523_v53 }
  0x7d   : > { %1605 = vmatprep.subr.bf16.mxu0 %v3616_v7  ;;  %4705 = vst [vmem:[#allocation60_spill] sm:$0xff] %v3645_v6  ;;  %v515_v7 = vld [vmem:[#allocation2 + $0x130] sm:$0xff]  ;;  %4707 = vst [vmem:[#allocation62_spill] sm:$0xff] %v3653_v54 }
  0x7e   : > { %1554 = vmatpush2.bf16.msra.mxu1 %v3610_v15  ;;  %4704 = vst [vmem:[#allocation59_spill] sm:$0xff] %v3643_v0  ;;  %v611_v15 = vld [vmem:[#allocation2 + $0x430] sm:$0xff]  ;;  %4706 = vst [vmem:[#allocation61_spill] sm:$0xff] %v3651_v34 }
  0x7f   : > { %1654 = vmatprep.subr.bf16.mxu1 %v3618_v62  ;;  %2792 = vmatmul.mubr.msk.bf16.vlgmr.msra.gmra.mxu0 %vm1437_vm1, %v3408_v1  ;;  %v511_v62 = vld [vmem:[#allocation2 + $0x110] sm:$0xff]  ;;  %v3659_v20 = vcombine.high %v607_v12, %v611_v15  ;;  %v3665_v47 = vcombine.low %v607_v12, %v611_v15 }
  0x80   : > { %1606 = vmatpush1.bf16.msra.mxu0 %v3622_v29  ;;  %1637 = vmatprep.mubr.bf16.mxu0 %v3452_v36  ;;  %v3657_v18 = vcombine.high %v511_v62, %v515_v7  ;;  %v540_v29 = vld [vmem:[#allocation2 + $0x1f8] sm:$0xff]  ;;  %v3663_v53 = vcombine.low %v511_v62, %v515_v7 }
  0x81   : > { %1556 = vmatmul.mubr.bf16.vlgmr.msra.gmra.mxu1 %v3568_v19  ;;  %1607 = vmatprep.subr.bf16.mxu0 %v3628_v9  ;;  %4709 = vst [vmem:[#allocation64_spill] sm:$0xff] %v3659_v20  ;;  %v507_v9 = vld [vmem:[#allocation2 + $0xf0] sm:$0xff]  ;;  %4711 = vst [vmem:[#allocation66_spill] sm:$0xff] %v3665_v47 }
  0x82   : > { %1655 = vmatpush1.bf16.msra.mxu1 %v3624_v30  ;;  %1678 = vmatprep.mubr.bf16.mxu1 %v4689_v46  ;;  %4708 = vst [vmem:[#allocation63_spill] sm:$0xff] %v3657_v18  ;;  %v536_v30 = vld [vmem:[#allocation2 + $0x1d8] sm:$0xff]  ;;  %4710 = vst [vmem:[#allocation65_spill] sm:$0xff] %v3663_v53 }
  0x83   : > { %1656 = vmatprep.subr.bf16.mxu1 %v3630_v31  ;;  %v503_v31 = vld [vmem:[#allocation2 + $0xd0] sm:$0xff]  ;;  %v3671_v17 = vcombine.high %v536_v30, %v540_v29  ;;  %v3677_v15 = vcombine.low %v536_v30, %v540_v29 }
  0x84   : > { %1608 = vmatpush1.bf16.msra.mxu0 %v3637_v8  ;;  %v3669_v52 = vcombine.high %v503_v31, %v507_v9  ;;  %v532_v8 = vld [vmem:[#allocation2 + $0x1b8] sm:$0xff]  ;;  %v3675_v7 = vcombine.low %v503_v31, %v507_v9 }
  0x85   : > { %1609 = vmatprep.subr.bf16.mxu0 %v3643_v0  ;;  %4713 = vst [vmem:[#allocation68_spill] sm:$0xff] %v3671_v17  ;;  %v499_v0 = vld [vmem:[#allocation2 + $0xb0] sm:$0xff]  ;;  %4714 = vst [vmem:[#allocation69_spill] sm:$0xff] %v3677_v15 }
  0x86   : > { %1657 = vmatpush1.bf16.msra.mxu1 %v3639_v63  ;;  %4712 = vst [vmem:[#allocation67_spill] sm:$0xff] %v3669_v52  ;;  %v528_v63 = vld [vmem:[#allocation2 + $0x198] sm:$0xff] }
  0x87   : > { %1658 = vmatprep.subr.bf16.mxu1 %v3645_v6  ;;  %v495_v6 = vld [vmem:[#allocation2 + $0x90] sm:$0xff]  ;;  %v3683_v62 = vcombine.high %v528_v63, %v532_v8  ;;  %v3691_v30 = vcombine.low %v528_v63, %v532_v8 }
  0x88   : > { %1610 = vmatpush1.bf16.msra.mxu0 %v3651_v34  ;;  %v3681_v12 = vcombine.high %v495_v6, %v499_v0  ;;  %v524_v34 = vld [vmem:[#allocation2 + $0x178] sm:$0xff]  ;;  %v3689_v29 = vcombine.low %v495_v6, %v499_v0 }
  0x89   : > { %1611 = vmatprep.subr.bf16.mxu0 %v3657_v18  ;;  %4716 = vst [vmem:[#allocation71_spill] sm:$0xff] %v3683_v62  ;;  %v491_v18 = vld [vmem:[#allocation2 + $0x70] sm:$0xff]  ;;  %4718 = vst [vmem:[#allocation73_spill] sm:$0xff] %v3691_v30 }
  0x8a   : > { %1659 = vmatpush1.bf16.msra.mxu1 %v3653_v54  ;;  %4715 = vst [vmem:[#allocation70_spill] sm:$0xff] %v3681_v12  ;;  %v520_v54 = vld [vmem:[#allocation2 + $0x158] sm:$0xff]  ;;  %4717 = vst [vmem:[#allocation72_spill] sm:$0xff] %v3689_v29 }
  0x8b   : > { %1660 = vmatprep.subr.bf16.mxu1 %v3659_v20  ;;  %v487_v20 = vld [vmem:[#allocation2 + $0x50] sm:$0xff]  ;;  %v3697_v31 = vcombine.high %v520_v54, %v524_v34  ;;  %v3704_v63 = vcombine.low %v520_v54, %v524_v34 }
  0x8c   : > { %1612 = vmatpush1.bf16.msra.mxu0 %v3663_v53  ;;  %v3695_v9 = vcombine.high %v487_v20, %v491_v18  ;;  %v516_v53 = vld [vmem:[#allocation2 + $0x138] sm:$0xff]  ;;  %v3702_v8 = vcombine.low %v487_v20, %v491_v18 }
  0x8d   : > { %1613 = vmatprep.subr.bf16.mxu0 %v3669_v52  ;;  %4720 = vst [vmem:[#allocation75_spill] sm:$0xff] %v3697_v31  ;;  %v483_v52 = vld [vmem:[#allocation2 + $0x30] sm:$0xff]  ;;  %4722 = vst [vmem:[#allocation77_spill] sm:$0xff] %v3704_v63 }
  0x8e   : > { %1661 = vmatpush1.bf16.msra.mxu1 %v3665_v47  ;;  %4719 = vst [vmem:[#allocation74_spill] sm:$0xff] %v3695_v9  ;;  %v512_v47 = vld [vmem:[#allocation2 + $0x118] sm:$0xff]  ;;  %4721 = vst [vmem:[#allocation76_spill] sm:$0xff] %v3702_v8 }
  0x8f   : > { %1687 = vmatprep.subr.bf16.mxu1 %v3671_v17  ;;  %v479_v17 = vld [vmem:[#allocation2 + $0x10] sm:$0xff]  ;;  %v3710_v6 = vcombine.high %v512_v47, %v516_v53  ;;  %v3716_v34 = vcombine.low %v512_v47, %v516_v53 }
  0x90   : > { %1614 = vmatpush1.bf16.msra.mxu0 %v3675_v7  ;;  %v3708_v0 = vcombine.high %v479_v17, %v483_v52  ;;  %v3714_v18 = vcombine.low %v479_v17, %v483_v52 }
  0x91   : > { %2793 = vmatmul.mubr.msk.bf16.vlgmr.msra.gmra.mxu1 %vm1437_vm1, %v3408_v1  ;;  %1615 = vmatprep.subr.bf16.mxu0 %v3681_v12  ;;  %4724 = vst [vmem:[#allocation79_spill] sm:$0xff] %v3710_v6  ;;  %v603_v12 = vld [vmem:[#allocation2 + $0x3f0] sm:$0xff]  ;;  %4726 = vst [vmem:[#allocation81_spill] sm:$0xff] %v3716_v34 }
  0x92   : > { %1688 = vmatpush1.bf16.msra.mxu1 %v3677_v15  ;;  %1719 = vmatprep.mubr.bf16.mxu1 %v3452_v36  ;;  %4723 = vst [vmem:[#allocation78_spill] sm:$0xff] %v3708_v0  ;;  %v504_v15 = vld [vmem:[#allocation2 + $0xd8] sm:$0xff]  ;;  %4725 = vst [vmem:[#allocation80_spill] sm:$0xff] %v3714_v18 }
  0x93   : > { %1689 = vmatprep.subr.bf16.mxu1 %v3683_v62  ;;  %v599_v62 = vld [vmem:[#allocation2 + $0x3d0] sm:$0xff]  ;;  %v508_v36 = vld [vmem:[#allocation2 + $0xf8] sm:$0xff] }
  0x94   : > { %1616 = vmatpush1.bf16.msra.mxu0 %v3689_v29  ;;  %v3720_v54 = vcombine.high %v599_v62, %v603_v12  ;;  %v3722_v20 = vcombine.high %v504_v15, %v508_v36  ;;  %v500_v29 = vld [vmem:[#allocation2 + $0xb8] sm:$0xff]  ;;  %v3726_v52 = vcombine.low %v599_v62, %v603_v12  ;;  %v3728_v53 = vcombine.low %v504_v15, %v508_v36 }
  0x95   : > { %1617 = vmatprep.subr.bf16.mxu0 %v3695_v9  ;;  %v595_v9 = vld [vmem:[#allocation2 + $0x3b0] sm:$0xff] }
  0x96   : > { %1690 = vmatpush1.bf16.msra.mxu1 %v3691_v30  ;;  %4727 = vst [vmem:[#allocation82_spill] sm:$0xff] %v3720_v54  ;;  %4728 = vst [vmem:[#allocation83_spill] sm:$0xff] %v3722_v20  ;;  %v496_v30 = vld [vmem:[#allocation2 + $0x98] sm:$0xff] }
  0x97   : > { %1691 = vmatprep.subr.bf16.mxu1 %v3697_v31  ;;  %v591_v31 = vld [vmem:[#allocation2 + $0x390] sm:$0xff]  ;;  %4729 = vst [vmem:[#allocation84_spill] sm:$0xff] %v3726_v52  ;;  %4730 = vst [vmem:[#allocation85_spill] sm:$0xff] %v3728_v53  ;;  %v3734_v17 = vcombine.high %v496_v30, %v500_v29  ;;  %v3740_v15 = vcombine.low %v496_v30, %v500_v29 }
  0x98   : > { %1618 = vmatpush1.bf16.msra.mxu0 %v3702_v8  ;;  %v3732_v47 = vcombine.high %v591_v31, %v595_v9  ;;  %v492_v8 = vld [vmem:[#allocation2 + $0x78] sm:$0xff]  ;;  %v3738_v12 = vcombine.low %v591_v31, %v595_v9 }
  0x99   : > { %1619 = vmatprep.subr.bf16.mxu0 %v3708_v0  ;;  %4732 = vst [vmem:[#allocation87_spill] sm:$0xff] %v3734_v17  ;;  %v587_v0 = vld [vmem:[#allocation2 + $0x370] sm:$0xff]  ;;  %4734 = vst [vmem:[#allocation89_spill] sm:$0xff] %v3740_v15 }
  0x9a   : > { %1692 = vmatpush1.bf16.msra.mxu1 %v3704_v63  ;;  %4731 = vst [vmem:[#allocation86_spill] sm:$0xff] %v3732_v47  ;;  %v488_v63 = vld [vmem:[#allocation2 + $0x58] sm:$0xff]  ;;  %4733 = vst [vmem:[#allocation88_spill] sm:$0xff] %v3738_v12 }
  0x9b   : > { %1693 = vmatprep.subr.bf16.mxu1 %v3710_v6  ;;  %v583_v6 = vld [vmem:[#allocation2 + $0x350] sm:$0xff]  ;;  %v3746_v36 = vcombine.high %v488_v63, %v492_v8  ;;  %v3752_v29 = vcombine.low %v488_v63, %v492_v8 }
  0x9c   : > { %1620 = vmatpush1.bf16.msra.mxu0 %v3714_v18  ;;  %v3744_v62 = vcombine.high %v583_v6, %v587_v0  ;;  %v484_v18 = vld [vmem:[#allocation2 + $0x38] sm:$0xff]  ;;  %v3750_v9 = vcombine.low %v583_v6, %v587_v0 }
  0x9d   : > { %1621 = vmatprep.subr.bf16.mxu0 %v3720_v54  ;;  %4736 = vst [vmem:[#allocation91_spill] sm:$0xff] %v3746_v36  ;;  %v579_v54 = vld [vmem:[#allocation2 + $0x330] sm:$0xff]  ;;  %4738 = vst [vmem:[#allocation93_spill] sm:$0xff] %v3752_v29 }
  0x9e   : > { %1694 = vmatpush1.bf16.msra.mxu1 %v3716_v34  ;;  %4735 = vst [vmem:[#allocation90_spill] sm:$0xff] %v3744_v62  ;;  %v480_v34 = vld [vmem:[#allocation2 + $0x18] sm:$0xff]  ;;  %4737 = vst [vmem:[#allocation92_spill] sm:$0xff] %v3750_v9 }
  0x9f   : > { %1695 = vmatprep.subr.bf16.mxu1 %v3722_v20  ;;  %v575_v20 = vld [vmem:[#allocation2 + $0x310] sm:$0xff]  ;;  %v3758_v31 = vcombine.high %v480_v34, %v484_v18  ;;  %v3764_v8 = vcombine.low %v480_v34, %v484_v18 }
  0xa0   : > { %1622 = vmatpush2.bf16.msra.mxu0 %v3726_v52  ;;  %v3756_v30 = vcombine.high %v575_v20, %v579_v54  ;;  %v604_v52 = vld [vmem:[#allocation2 + $0x3f8] sm:$0xff]  ;;  %v3762_v0 = vcombine.low %v575_v20, %v579_v54 }
  0xa1   : > { %1623 = vmatprep.subr.bf16.mxu0 %v3732_v47  ;;  %4740 = vst [vmem:[#allocation95_spill] sm:$0xff] %v3758_v31  ;;  %v571_v47 = vld [vmem:[#allocation2 + $0x2f0] sm:$0xff]  ;;  %4742 = vst [vmem:[#allocation97_spill] sm:$0xff] %v3764_v8 }
  0xa2   : > { %1696 = vmatpush1.bf16.msra.mxu1 %v3728_v53  ;;  %4739 = vst [vmem:[#allocation94_spill] sm:$0xff] %v3756_v30  ;;  %v600_v53 = vld [vmem:[#allocation2 + $0x3d8] sm:$0xff]  ;;  %4741 = vst [vmem:[#allocation96_spill] sm:$0xff] %v3762_v0 }
  0xa3   : > { %1697 = vmatprep.subr.bf16.mxu1 %v3734_v17  ;;  %v567_v17 = vld [vmem:[#allocation2 + $0x2d0] sm:$0xff]  ;;  %v3770_v6 = vcombine.high %v600_v53, %v604_v52  ;;  %v3776_v18 = vcombine.low %v600_v53, %v604_v52 }
  0xa4   : > { %1624 = vmatpush2.bf16.msra.mxu0 %v3738_v12  ;;  %v3768_v63 = vcombine.high %v567_v17, %v571_v47  ;;  %v596_v12 = vld [vmem:[#allocation2 + $0x3b8] sm:$0xff]  ;;  %v3774_v54 = vcombine.low %v567_v17, %v571_v47 }
  0xa5   : > { %1625 = vmatprep.subr.bf16.mxu0 %v3744_v62  ;;  %4744 = vst [vmem:[#allocation99_spill] sm:$0xff] %v3770_v6  ;;  %v563_v62 = vld [vmem:[#allocation2 + $0x2b0] sm:$0xff]  ;;  %4746 = vst [vmem:[#allocation101_spill] sm:$0xff] %v3776_v18 }
  0xa6   : > { %1698 = vmatpush1.bf16.msra.mxu1 %v3740_v15  ;;  %4743 = vst [vmem:[#allocation98_spill] sm:$0xff] %v3768_v63  ;;  %v592_v15 = vld [vmem:[#allocation2 + $0x398] sm:$0xff]  ;;  %4745 = vst [vmem:[#allocation100_spill] sm:$0xff] %v3774_v54 }
  0xa7   : > { %1699 = vmatprep.subr.bf16.mxu1 %v3746_v36  ;;  %v559_v36 = vld [vmem:[#allocation2 + $0x290] sm:$0xff]  ;;  %v3782_v20 = vcombine.high %v592_v15, %v596_v12  ;;  %v3788_v52 = vcombine.low %v592_v15, %v596_v12 }
  0xa8   : > { %1626 = vmatpush2.bf16.msra.mxu0 %v3750_v9  ;;  %v3780_v34 = vcombine.high %v559_v36, %v563_v62  ;;  %v588_v9 = vld [vmem:[#allocation2 + $0x378] sm:$0xff]  ;;  %v3786_v47 = vcombine.low %v559_v36, %v563_v62 }
  0xa9   : > { %1627 = vmatprep.subr.bf16.mxu0 %v3756_v30  ;;  %4748 = vst [vmem:[#allocation103_spill] sm:$0xff] %v3782_v20  ;;  %v555_v30 = vld [vmem:[#allocation2 + $0x270] sm:$0xff]  ;;  %4750 = vst [vmem:[#allocation105_spill] sm:$0xff] %v3788_v52 }
  0xaa   : > { %1700 = vmatpush1.bf16.msra.mxu1 %v3752_v29  ;;  %4747 = vst [vmem:[#allocation102_spill] sm:$0xff] %v3780_v34  ;;  %v584_v29 = vld [vmem:[#allocation2 + $0x358] sm:$0xff]  ;;  %4749 = vst [vmem:[#allocation104_spill] sm:$0xff] %v3786_v47 }
  0xab   : > { %1701 = vmatprep.subr.bf16.mxu1 %v3758_v31  ;;  %v551_v31 = vld [vmem:[#allocation2 + $0x250] sm:$0xff]  ;;  %v3794_v17 = vcombine.high %v584_v29, %v588_v9  ;;  %v3800_v12 = vcombine.low %v584_v29, %v588_v9 }
  0xac   : > { %1628 = vmatpush2.bf16.msra.mxu0 %v3762_v0  ;;  %v3792_v53 = vcombine.high %v551_v31, %v555_v30  ;;  %v580_v0 = vld [vmem:[#allocation2 + $0x338] sm:$0xff]  ;;  %v3798_v62 = vcombine.low %v551_v31, %v555_v30 }
  0xad   : > { %1629 = vmatprep.subr.bf16.mxu0 %v3768_v63  ;;  %4752 = vst [vmem:[#allocation107_spill] sm:$0xff] %v3794_v17  ;;  %v547_v63 = vld [vmem:[#allocation2 + $0x230] sm:$0xff]  ;;  %4754 = vst [vmem:[#allocation109_spill] sm:$0xff] %v3800_v12 }
  0xae   : > { %1702 = vmatpush1.bf16.msra.mxu1 %v3764_v8  ;;  %4751 = vst [vmem:[#allocation106_spill] sm:$0xff] %v3792_v53  ;;  %v576_v8 = vld [vmem:[#allocation2 + $0x318] sm:$0xff]  ;;  %4753 = vst [vmem:[#allocation108_spill] sm:$0xff] %v3798_v62 }
  0xaf   : > { %1703 = vmatprep.subr.bf16.mxu1 %v3770_v6  ;;  %v543_v6 = vld [vmem:[#allocation2 + $0x210] sm:$0xff]  ;;  %v3806_v36 = vcombine.high %v576_v8, %v580_v0  ;;  %v3812_v9 = vcombine.low %v576_v8, %v580_v0 }
  0xb0   : > { %1630 = vmatpush2.bf16.msra.mxu0 %v3774_v54  ;;  %v3804_v15 = vcombine.high %v543_v6, %v547_v63  ;;  %v636_v54 = vld [vmem:[#allocation2 + $0x4f8] sm:$0xff]  ;;  %v3810_v30 = vcombine.low %v543_v6, %v547_v63 }
  0xb1   : > { %1631 = vmatprep.subr.bf16.mxu0 %v3780_v34  ;;  %4756 = vst [vmem:[#allocation111_spill] sm:$0xff] %v3806_v36  ;;  %v572_v34 = vld [vmem:[#allocation2 + $0x2f8] sm:$0xff]  ;;  %4758 = vst [vmem:[#allocation113_spill] sm:$0xff] %v3812_v9 }
  0xb2   : > { %1704 = vmatpush2.bf16.msra.mxu1 %v3776_v18  ;;  %4755 = vst [vmem:[#allocation110_spill] sm:$0xff] %v3804_v15  ;;  %v632_v18 = vld [vmem:[#allocation2 + $0x4d8] sm:$0xff]  ;;  %4757 = vst [vmem:[#allocation112_spill] sm:$0xff] %v3810_v30 }
  0xb3   : > { %1705 = vmatprep.subr.bf16.mxu1 %v3782_v20  ;;  %v568_v20 = vld [vmem:[#allocation2 + $0x2d8] sm:$0xff]  ;;  %v3818_v31 = vcombine.high %v632_v18, %v636_v54  ;;  %v3824_v0 = vcombine.low %v632_v18, %v636_v54 }
  0xb4   : > { %1632 = vmatpush2.bf16.msra.mxu0 %v3786_v47  ;;  %v3816_v29 = vcombine.high %v568_v20, %v572_v34  ;;  %v628_v47 = vld [vmem:[#allocation2 + $0x4b8] sm:$0xff]  ;;  %v3822_v63 = vcombine.low %v568_v20, %v572_v34 }
  0xb5   : > { %1633 = vmatprep.subr.bf16.mxu0 %v3792_v53  ;;  %4760 = vst [vmem:[#allocation115_spill] sm:$0xff] %v3818_v31  ;;  %v564_v53 = vld [vmem:[#allocation2 + $0x2b8] sm:$0xff] }
  0xb6   : > { %1706 = vmatpush2.bf16.msra.mxu1 %v3788_v52  ;;  %4759 = vst [vmem:[#allocation114_spill] sm:$0xff] %v3816_v29  ;;  %v624_v52 = vld [vmem:[#allocation2 + $0x498] sm:$0xff] }
  0xb7   : > { %1707 = vmatprep.subr.bf16.mxu1 %v3794_v17  ;;  %v560_v17 = vld [vmem:[#allocation2 + $0x298] sm:$0xff]  ;;  %v3830_v6 = vcombine.high %v624_v52, %v628_v47  ;;  %v3837_v18 = vcombine.low %v624_v52, %v628_v47 }
  0xb8   : > { %1634 = vmatpush2.bf16.msra.mxu0 %v3798_v62  ;;  %v3828_v8 = vcombine.high %v560_v17, %v564_v53  ;;  %v620_v62 = vld [vmem:[#allocation2 + $0x478] sm:$0xff]  ;;  %v3835_v54 = vcombine.low %v560_v17, %v564_v53 }
  0xb9   : > { %1635 = vmatprep.subr.bf16.mxu0 %v3804_v15  ;;  %4761 = vst [vmem:[#allocation116_spill] sm:$0xff] %v3830_v6  ;;  %v556_v15 = vld [vmem:[#allocation2 + $0x278] sm:$0xff] }
  0xba   : > { %1708 = vmatpush2.bf16.msra.mxu1 %v3800_v12  ;;  %v616_v12 = vld [vmem:[#allocation2 + $0x458] sm:$0xff]  ;;  %4762 = vst [vmem:[#allocation117_spill] sm:$0xff] %v3835_v54 }
  0xbb   : > { %1709 = vmatprep.subr.bf16.mxu1 %v3806_v36  ;;  %v552_v36 = vld [vmem:[#allocation2 + $0x258] sm:$0xff]  ;;  %v3843_v20 = vcombine.high %v616_v12, %v620_v62  ;;  %v3850_v52 = vcombine.low %v616_v12, %v620_v62  ;;  %v4793_v62 = vld [vmem:[#allocation38_spill] sm:$0xff]  ;;  %v4794_v12 = vld [vmem:[#allocation39_spill] sm:$0xff] }
  0xbc   : > { %1636 = vmatpush2.bf16.msra.mxu0 %v3810_v30  ;;  %v3841_v34 = vcombine.high %v552_v36, %v556_v15  ;;  %v612_v30 = vld [vmem:[#allocation2 + $0x438] sm:$0xff]  ;;  %v3848_v47 = vcombine.low %v552_v36, %v556_v15  ;;  %v4795_v15 = vld [vmem:[#allocation40_spill] sm:$0xff] }
  0xbd   : > { %1736 = vmatprep.subr.bf16.mxu0 %v3818_v31  ;;  %v544_v31 = vld [vmem:[#allocation2 + $0x218] sm:$0xff] }
  0xbe   : > { %1710 = vmatpush2.bf16.msra.mxu1 %v3812_v9  ;;  %v608_v9 = vld [vmem:[#allocation2 + $0x418] sm:$0xff] }
  0xbf   : > { %1711 = vmatprep.subr.bf16.mxu1 %v3816_v29  ;;  %1638 = vmatmul.mubr.bf16.vlgmr.msra.gmra.mxu0 %v3568_v19  ;;  %v548_v29 = vld [vmem:[#allocation2 + $0x238] sm:$0xff]  ;;  %v3856_v17 = vcombine.high %v608_v9, %v612_v30 }
  0xc0   : > { %1737 = vmatpush1.bf16.msra.mxu0 %v3824_v0  ;;  %1760 = vmatprep.mubr.bf16.mxu0 %v4689_v46  ;;  %v3854_v53 = vcombine.high %v544_v31, %v548_v29  ;;  %v4796_v36 = vld [vmem:[#allocation41_spill] sm:$0xff] }
  0xc1   : > { %1738 = vmatprep.subr.bf16.mxu0 %v3830_v6  ;;  %v3860_v6 = vcombine.low %v544_v31, %v548_v29  ;;  %v4799_v29 = vld [vmem:[#allocation44_spill] sm:$0xff]  ;;  %v4800_v31 = vld [vmem:[#allocation45_spill] sm:$0xff] }
  0xc2   : > { %1712 = vmatpush2.bf16.msra.mxu1 %v3822_v63 }
  0xc3   : > { %1713 = vmatprep.subr.bf16.mxu1 %v3828_v8 }
  0xc4   : > { %1739 = vmatpush1.bf16.msra.mxu0 %v3837_v18 }
  0xc5   : > { %1740 = vmatprep.subr.bf16.mxu0 %v3843_v20 }
  0xc6   : > { %1714 = vmatpush2.bf16.msra.mxu1 %v3835_v54  ;;  %v3862_v54 = vcombine.low %v608_v9, %v612_v30  ;;  %v4797_v30 = vld [vmem:[#allocation42_spill] sm:$0xff]  ;;  %v4798_v9 = vld [vmem:[#allocation43_spill] sm:$0xff] }
  0xc7   : > { %1715 = vmatprep.subr.bf16.mxu1 %v3841_v34 }
  0xc8   : > { %1741 = vmatpush1.bf16.msra.mxu0 %v3850_v52 }
  0xc9   : > { %1742 = vmatprep.subr.bf16.mxu0 %v3856_v17 }
  0xca   : > { %1716 = vmatpush2.bf16.msra.mxu1 %v3848_v47 }
  0xcb   : > { %1717 = vmatprep.subr.bf16.mxu1 %v3854_v53 }
  0xcc   : > { %1743 = vmatpush1.bf16.msra.mxu0 %v3862_v54 }
  0xcd   : > { %1772 = vmatprep.subr.bf16.mxu0 %v3354_v23 }
  0xce   : > { %1718 = vmatpush2.bf16.msra.mxu1 %v3860_v6 }
  0xcf   : > { %1821 = vmatprep.subr.bf16.mxu1 %v3358_v28  ;;  %2794 = vmatmul.mubr.msk.bf16.vlgmr.msra.gmra.mxu0 %vm1437_vm1, %v3408_v1  ;;  %v4775_v1 = vld [vmem:[#allocation20_spill] sm:$0xff] }
  0xd0   : > { %1773 = vmatpush1.bf16.msra.mxu0 %v3352_v22  ;;  %1804 = vmatprep.mubr.bf16.mxu0 %v3437_v16 }
  0xd1   : > { %1720 = vmatmul.mubr.bf16.vlgmr.msra.gmra.mxu1 %v3568_v19  ;;  %1774 = vmatprep.subr.bf16.mxu0 %v3362_v32  ;;  %v4792_v19 = vld [vmem:[#allocation37_spill] sm:$0xff] }
  0xd2   : > { %1822 = vmatpush1.bf16.msra.mxu1 %v3356_v27  ;;  %1845 = vmatprep.mubr.bf16.mxu1 %v4689_v46 }
  0xd3   : > { %1823 = vmatprep.subr.bf16.mxu1 %v3364_v33 }
  0xd4   : > { %1775 = vmatpush1.bf16.msra.mxu0 %v3372_v38  ;;  %v4763_v38 = vld [vmem:[#allocation8_spill] sm:$0xff] }
  0xd5   : > { %1776 = vmatprep.subr.bf16.mxu0 %v3378_v40  ;;  %v4765_v40 = vld [vmem:[#allocation10_spill] sm:$0xff] }
  0xd6   : > { %1824 = vmatpush1.bf16.msra.mxu1 %v3374_v39  ;;  %v4764_v39 = vld [vmem:[#allocation9_spill] sm:$0xff] }
  0xd7   : > { %1825 = vmatprep.subr.bf16.mxu1 %v3380_v41  ;;  %v4766_v41 = vld [vmem:[#allocation11_spill] sm:$0xff] }
  0xd8   : > { %1777 = vmatpush1.bf16.msra.mxu0 %v3386_v48  ;;  %v4767_v48 = vld [vmem:[#allocation12_spill] sm:$0xff] }
  0xd9   : > { %1778 = vmatprep.subr.bf16.mxu0 %v3392_v50  ;;  %v4769_v50 = vld [vmem:[#allocation14_spill] sm:$0xff] }
  0xda   : > { %1826 = vmatpush1.bf16.msra.mxu1 %v3388_v49  ;;  %v4768_v49 = vld [vmem:[#allocation13_spill] sm:$0xff] }
  0xdb   : > { %1827 = vmatprep.subr.bf16.mxu1 %v3394_v51  ;;  %v4770_v51 = vld [vmem:[#allocation15_spill] sm:$0xff] }
  0xdc   : > { %1779 = vmatpush1.bf16.msra.mxu0 %v3398_v57  ;;  %v4771_v57 = vld [vmem:[#allocation16_spill] sm:$0xff] }
  0xdd   : > { %1780 = vmatprep.subr.bf16.mxu0 %v3404_v59  ;;  %v4773_v59 = vld [vmem:[#allocation18_spill] sm:$0xff] }
  0xde   : > { %1828 = vmatpush1.bf16.msra.mxu1 %v3400_v58  ;;  %v4772_v58 = vld [vmem:[#allocation17_spill] sm:$0xff] }
  0xdf   : > { %1854 = vmatprep.subr.bf16.mxu1 %v3406_v60  ;;  %v4774_v60 = vld [vmem:[#allocation19_spill] sm:$0xff] }
  0xe0   : > { %1781 = vmatpush1.bf16.msra.mxu0 %v3412_v2 }
  0xe1   : > { %2795 = vmatmul.mubr.msk.bf16.vlgmr.msra.gmra.mxu1 %vm1437_vm1, %v3366_v37  ;;  %1782 = vmatprep.subr.bf16.mxu0 %v3418_v4  ;;  %v4777_v4 = vld [vmem:[#allocation22_spill] sm:$0xff] }
  0xe2   : > { %1855 = vmatpush1.bf16.msra.mxu1 %v3414_v3  ;;  %1886 = vmatprep.mubr.bf16.mxu1 %v3437_v16  ;;  %v4776_v3 = vld [vmem:[#allocation21_spill] sm:$0xff] }
  0xe3   : > { %1856 = vmatprep.subr.bf16.mxu1 %v3420_v5 }
  0xe4   : > { %1783 = vmatpush1.bf16.msra.mxu0 %v3426_v10  ;;  %v4778_v10 = vld [vmem:[#allocation23_spill] sm:$0xff] }
  0xe5   : > { %1784 = vmatprep.subr.bf16.mxu0 %v3433_v13 }
  0xe6   : > { %1857 = vmatpush1.bf16.msra.mxu1 %v3428_v11  ;;  %v4779_v11 = vld [vmem:[#allocation24_spill] sm:$0xff] }
  0xe7   : > { %1858 = vmatprep.subr.bf16.mxu1 %v3435_v14  ;;  %v4780_v14 = vld [vmem:[#allocation26_spill] sm:$0xff] }
  0xe8   : > { %1785 = vmatpush1.bf16.msra.mxu0 %v3442_v21 }
  0xe9   : > { %1786 = vmatprep.subr.bf16.mxu0 %v3448_v25  ;;  %v4782_v25 = vld [vmem:[#allocation28_spill] sm:$0xff] }
  0xea   : > { %1859 = vmatpush1.bf16.msra.mxu1 %v3444_v24  ;;  %v4781_v24 = vld [vmem:[#allocation27_spill] sm:$0xff] }
  0xeb   : > { %1860 = vmatprep.subr.bf16.mxu1 %v3450_v26  ;;  %v4783_v26 = vld [vmem:[#allocation29_spill] sm:$0xff] }
  0xec   : > { %1787 = vmatpush1.bf16.msra.mxu0 %v3456_v42  ;;  %v4784_v42 = vld [vmem:[#allocation30_spill] sm:$0xff] }
  0xed   : > { %1788 = vmatprep.subr.bf16.mxu0 %v3462_v44  ;;  %v4786_v44 = vld [vmem:[#allocation32_spill] sm:$0xff] }
  0xee   : > { %1861 = vmatpush1.bf16.msra.mxu1 %v3458_v43  ;;  %v373_v22 = vpop.f32.mrf.mxu0  ;;  %v444_v23 = vpop.f32.mrf.mxu1  ;;  %v4785_v43 = vld [vmem:[#allocation31_spill] sm:$0xff] }
  0xef   : > { %1862 = vmatprep.subr.bf16.mxu1 %v3464_v45  ;;  %v3910_v27 = vmul.f32 %v444_v23, %v373_v22  ;;  %v4787_v45 = vld [vmem:[#allocation33_spill] sm:$0xff]  ;;  %v4801_v22 = vld [vmem:[#allocation46_spill] sm:$0xff]  ;;  %v4802_v23 = vld [vmem:[#allocation47_spill] sm:$0xff] }
  0xf0   : > { %1789 = vmatpush2.bf16.msra.mxu0 %v3470_v55  ;;  %v375_v28 = vpop.f32.mrf.mxu0  ;;  %v446_v32 = vpop.f32.mrf.mxu1  ;;  %v4788_v55 = vld [vmem:[#allocation34_spill] sm:$0xff] }
  0xf1   : > { %v3914_v33 = vmul.f32 %v446_v32, %v375_v28  ;;  %1790 = vmatprep.subr.bf16.mxu0 %v3476_v61  ;;  %v4790_v61 = vld [vmem:[#allocation36_spill] sm:$0xff]  ;;  %v4804_v32 = vld [vmem:[#allocation49_spill] sm:$0xff] }
  0xf2   : > { %1863 = vmatpush1.bf16.msra.mxu1 %v3472_v56  ;;  %v4789_v56 = vld [vmem:[#allocation35_spill] sm:$0xff]  ;;  %v4803_v28 = vld [vmem:[#allocation48_spill] sm:$0xff] }
  0xf3   : > { %1864 = vmatprep.subr.bf16.mxu1 %v4763_v38  ;;  %v4805_v38 = vld [vmem:[#allocation50_spill] sm:$0xff] }
  0xf4   : > { %1791 = vmatpush2.bf16.msra.mxu0 %v4764_v39  ;;  %v4806_v39 = vld [vmem:[#allocation51_spill] sm:$0xff] }
  0xf5   : > { %1792 = vmatprep.subr.bf16.mxu0 %v4766_v41  ;;  %v4808_v41 = vld [vmem:[#allocation53_spill] sm:$0xff] }
  0xf6   : > { %1865 = vmatpush1.bf16.msra.mxu1 %v4765_v40  ;;  %v4807_v40 = vld [vmem:[#allocation52_spill] sm:$0xff] }
  0xf7   : > { %1866 = vmatprep.subr.bf16.mxu1 %v4767_v48  ;;  %v4809_v48 = vld [vmem:[#allocation54_spill] sm:$0xff] }
  0xf8   : > { %1793 = vmatpush2.bf16.msra.mxu0 %v4768_v49  ;;  %v4810_v49 = vld [vmem:[#allocation55_spill] sm:$0xff] }
  0xf9   : > { %1794 = vmatprep.subr.bf16.mxu0 %v4770_v51  ;;  %v4812_v51 = vld [vmem:[#allocation57_spill] sm:$0xff] }
  0xfa   : > { %1867 = vmatpush1.bf16.msra.mxu1 %v4769_v50  ;;  %v4811_v50 = vld [vmem:[#allocation56_spill] sm:$0xff] }
  0xfb   : > { %1868 = vmatprep.subr.bf16.mxu1 %v4771_v57  ;;  %v4813_v57 = vld [vmem:[#allocation58_spill] sm:$0xff] }
  0xfc   : > { %1795 = vmatpush2.bf16.msra.mxu0 %v4772_v58  ;;  %v4814_v58 = vld [vmem:[#allocation59_spill] sm:$0xff] }
  0xfd   : > { %1796 = vmatprep.subr.bf16.mxu0 %v4774_v60  ;;  %v4816_v60 = vld [vmem:[#allocation61_spill] sm:$0xff] }
  0xfe   : > { %1869 = vmatpush1.bf16.msra.mxu1 %v4773_v59  ;;  %v4815_v59 = vld [vmem:[#allocation60_spill] sm:$0xff] }
  0xff   : > { %1870 = vmatprep.subr.bf16.mxu1 %v4775_v1  ;;  %v4817_v1 = vld [vmem:[#allocation62_spill] sm:$0xff] }
 0x100   : > { %1797 = vmatpush2.bf16.msra.mxu0 %v4776_v3  ;;  %v4818_v3 = vld [vmem:[#allocation63_spill] sm:$0xff] }
 0x101   : > { %v1516_v2 = vpop.f32.mrf.mxu1  ;;  %1798 = vmatprep.subr.bf16.mxu0 %v4778_v10  ;;  %v4820_v10 = vld [vmem:[#allocation65_spill] sm:$0xff] }
 0x102   : > { %1871 = vmatpush2.bf16.msra.mxu1 %v4777_v4  ;;  %v4819_v4 = vld [vmem:[#allocation64_spill] sm:$0xff] }
 0x103   : > { %v3932_v5 = vpop.f32.mrf.mxu1  ;;  %1872 = vmatprep.subr.bf16.mxu1 %v4779_v11  ;;  %v4821_v11 = vld [vmem:[#allocation66_spill] sm:$0xff] }
 0x104   : > { %1799 = vmatpush2.bf16.msra.mxu0 %v3533_v35  ;;  %v4791_v35 = vld [vmem:[#allocation25_spill] sm:$0xff] }
 0x105   : > { %v1520_v13 = vpop.f32.mrf.mxu1  ;;  %1800 = vmatprep.subr.bf16.mxu0 %v4781_v24 }
 0x106   : > { %1873 = vmatpush2.bf16.msra.mxu1 %v4780_v14  ;;  %v4822_v13 = vld [vmem:[#allocation67_spill] sm:$0xff]  ;;  %v4823_v14 = vld [vmem:[#allocation68_spill] sm:$0xff] }
 0x107   : > { %v1521_v21 = vpop.f32.mrf.mxu1  ;;  %1874 = vmatprep.subr.bf16.mxu1 %v4782_v25  ;;  %v4824_v25 = vld [vmem:[#allocation69_spill] sm:$0xff] }
 0x108   : > { %1801 = vmatpush2.bf16.msra.mxu0 %v4783_v26 }
 0x109   : > { %1802 = vmatprep.subr.bf16.mxu0 %v4785_v43  ;;  %v4826_v43 = vld [vmem:[#allocation71_spill] sm:$0xff] }
 0x10a   : > { %1875 = vmatpush2.bf16.msra.mxu1 %v4784_v42  ;;  %v4825_v42 = vld [vmem:[#allocation70_spill] sm:$0xff] }
 0x10b   : > { %1876 = vmatprep.subr.bf16.mxu1 %v4786_v44 }
 0x10c   : > { %1803 = vmatpush2.bf16.msra.mxu0 %v4787_v45 }
 0x10d   : > { %1903 = vmatprep.subr.bf16.mxu0 %v4790_v61  ;;  %v4829_v61 = vld [vmem:[#allocation74_spill] sm:$0xff] }
 0x10e   : > { %1877 = vmatpush2.bf16.msra.mxu1 %v4788_v55  ;;  %v4827_v55 = vld [vmem:[#allocation72_spill] sm:$0xff] }
 0x10f   : > { %1878 = vmatprep.subr.bf16.mxu1 %v4789_v56  ;;  %1805 = vmatmul.mubr.bf16.vlgmr.msra.gmra.mxu0 %v4791_v35  ;;  %v4828_v56 = vld [vmem:[#allocation73_spill] sm:$0xff] }
 0x110   : > { %1904 = vmatpush1.bf16.msra.mxu0 %v4793_v62  ;;  %1927 = vmatprep.mubr.bf16.mxu0 %v4689_v46  ;;  %v4832_v62 = vld [vmem:[#allocation77_spill] sm:$0xff] }
 0x111   : > { %1905 = vmatprep.subr.bf16.mxu0 %v4795_v15  ;;  %v4835_v15 = vld [vmem:[#allocation80_spill] sm:$0xff] }
 0x112   : > { %1879 = vmatpush2.bf16.msra.mxu1 %v4792_v19  ;;  %v4831_v19 = vld [vmem:[#allocation76_spill] sm:$0xff] }
 0x113   : > { %1880 = vmatprep.subr.bf16.mxu1 %v4794_v12  ;;  %v4833_v12 = vld [vmem:[#allocation78_spill] sm:$0xff] }
 0x114   : > { %1906 = vmatpush1.bf16.msra.mxu0 %v4797_v30  ;;  %v4838_v30 = vld [vmem:[#allocation83_spill] sm:$0xff] }
 0x115   : > { %1907 = vmatprep.subr.bf16.mxu0 %v4799_v29 }
 0x116   : > { %1881 = vmatpush2.bf16.msra.mxu1 %v4796_v36  ;;  %v4837_v36 = vld [vmem:[#allocation82_spill] sm:$0xff] }
 0x117   : > { %1882 = vmatprep.subr.bf16.mxu1 %v4798_v9 }
 0x118   : > { %1908 = vmatpush1.bf16.msra.mxu0 %v4801_v22  ;;  %v4839_v22 = vld [vmem:[#allocation84_spill] sm:$0xff] }
 0x119   : > { %1909 = vmatprep.subr.bf16.mxu0 %v4803_v28 }
 0x11a   : > { %1883 = vmatpush2.bf16.msra.mxu1 %v4800_v31 }
 0x11b   : > { %1884 = vmatprep.subr.bf16.mxu1 %v4802_v23  ;;  %v4840_v23 = vld [vmem:[#allocation85_spill] sm:$0xff] }
 0x11c   : > { %1910 = vmatpush1.bf16.msra.mxu0 %v4805_v38  ;;  %v4841_v38 = vld [vmem:[#allocation86_spill] sm:$0xff] }
 0x11d   : > { %1936 = vmatprep.subr.bf16.mxu0 %v4806_v39  ;;  %v4842_v39 = vld [vmem:[#allocation87_spill] sm:$0xff] }
 0x11e   : > { %1885 = vmatpush2.bf16.msra.mxu1 %v4804_v32 }
 0x11f   : > { %1985 = vmatprep.subr.bf16.mxu1 %v4807_v40  ;;  %2796 = vmatmul.mubr.msk.bf16.vlgmr.msra.gmra.mxu0 %vm1437_vm1, %v3366_v37 }
 0x120   : > { %1937 = vmatpush1.bf16.msra.mxu0 %v4808_v41  ;;  %1968 = vmatprep.mubr.bf16.mxu0 %v3437_v16 }
 0x121   : > { %1887 = vmatmul.mubr.bf16.vlgmr.msra.gmra.mxu1 %v4791_v35  ;;  %1938 = vmatprep.subr.bf16.mxu0 %v4810_v49  ;;  %v4843_v49 = vld [vmem:[#allocation88_spill] sm:$0xff] }
 0x122   : > { %1986 = vmatpush1.bf16.msra.mxu1 %v4809_v48  ;;  %2009 = vmatprep.mubr.bf16.mxu1 %v4689_v46 }
 0x123   : > { %1987 = vmatprep.subr.bf16.mxu1 %v4811_v50  ;;  %v4844_v50 = vld [vmem:[#allocation89_spill] sm:$0xff] }
 0x124   : > { %1939 = vmatpush1.bf16.msra.mxu0 %v4812_v51 }
 0x125   : > { %1940 = vmatprep.subr.bf16.mxu0 %v4814_v58  ;;  %v4845_v58 = vld [vmem:[#allocation90_spill] sm:$0xff] }
 0x126   : > { %1988 = vmatpush1.bf16.msra.mxu1 %v4813_v57 }
 0x127   : > { %1989 = vmatprep.subr.bf16.mxu1 %v4815_v59  ;;  %v4846_v59 = vld [vmem:[#allocation91_spill] sm:$0xff] }
 0x128   : > { %1941 = vmatpush1.bf16.msra.mxu0 %v4816_v60  ;;  %v4847_v60 = vld [vmem:[#allocation92_spill] sm:$0xff] }
 0x129   : > { %1942 = vmatprep.subr.bf16.mxu0 %v4818_v3  ;;  %v4849_v3 = vld [vmem:[#allocation94_spill] sm:$0xff] }
 0x12a   : > { %1990 = vmatpush1.bf16.msra.mxu1 %v4817_v1  ;;  %v4848_v1 = vld [vmem:[#allocation93_spill] sm:$0xff] }
 0x12b   : > { %1991 = vmatprep.subr.bf16.mxu1 %v4819_v4  ;;  %v4850_v4 = vld [vmem:[#allocation95_spill] sm:$0xff] }
 0x12c   : > { %1943 = vmatpush1.bf16.msra.mxu0 %v4820_v10  ;;  %v4851_v10 = vld [vmem:[#allocation96_spill] sm:$0xff] }
 0x12d   : > { %1944 = vmatprep.subr.bf16.mxu0 %v4822_v13  ;;  %v4853_v13 = vld [vmem:[#allocation98_spill] sm:$0xff] }
 0x12e   : > { %1992 = vmatpush1.bf16.msra.mxu1 %v4821_v11  ;;  %v4852_v11 = vld [vmem:[#allocation97_spill] sm:$0xff] }
 0x12f   : > { %2018 = vmatprep.subr.bf16.mxu1 %v4823_v14  ;;  %v1475_v21 = vpop.f32.mrf.mxu0  ;;  %v4854_v14 = vld [vmem:[#allocation99_spill] sm:$0xff] }
 0x130   : > { %v3989_v24 = vadd.f32 %v1516_v2, %v1475_v21  ;;  %1945 = vmatpush1.bf16.msra.mxu0 %v3675_v7  ;;  %v4830_v7 = vld [vmem:[#allocation75_spill] sm:$0xff] }
 0x131   : > { %2797 = vmatmul.mubr.msk.bf16.vlgmr.msra.gmra.mxu1 %vm1437_vm1, %v3366_v37  ;;  %v1477_v26 = vpop.f32.mrf.mxu0  ;;  %1946 = vmatprep.subr.bf16.mxu0 %v4825_v42 }
 0x132   : > { %2019 = vmatpush1.bf16.msra.mxu1 %v4824_v25  ;;  %v3996_v44 = vadd.f32 %v3932_v5, %v1477_v26  ;;  %2050 = vmatprep.mubr.bf16.mxu1 %v3437_v16  ;;  %v4834_v5 = vld [vmem:[#allocation79_spill] sm:$0xff]  ;;  %v4836_v16 = vld [vmem:[#allocation81_spill] sm:$0xff]  ;;  %v4855_v25 = vld [vmem:[#allocation100_spill] sm:$0xff] }
 0x133   : > { %2020 = vmatprep.subr.bf16.mxu1 %v4826_v43  ;;  %v1479_v45 = vpop.f32.mrf.mxu0  ;;  %v4856_v26 = vld [vmem:[#allocation101_spill] sm:$0xff]  ;;  %v4857_v43 = vld [vmem:[#allocation102_spill] sm:$0xff] }
 0x134   : > { %1947 = vmatpush1.bf16.msra.mxu0 %v4827_v55  ;;  %v4858_v45 = vld [vmem:[#allocation103_spill] sm:$0xff] }
 0x135   : > { %v1480_v2 = vpop.f32.mrf.mxu0  ;;  %1948 = vmatprep.subr.bf16.mxu0 %v4829_v61 }
 0x136   : > { %2021 = vmatpush1.bf16.msra.mxu1 %v4828_v56  ;;  %v4859_v56 = vld [vmem:[#allocation104_spill] sm:$0xff]  ;;  %v4860_v2 = vld [vmem:[#allocation105_spill] sm:$0xff] }
 0x137   : > { %2022 = vmatprep.subr.bf16.mxu1 %v4830_v7  ;;  %v4861_v7 = vld [vmem:[#allocation106_spill] sm:$0xff] }
 0x138   : > { %1949 = vmatpush1.bf16.msra.mxu0 %v4831_v19  ;;  %v4862_v19 = vld [vmem:[#allocation107_spill] sm:$0xff] }
 0x139   : > { %1950 = vmatprep.subr.bf16.mxu0 %v4833_v12  ;;  %v4864_v12 = vld [vmem:[#allocation109_spill] sm:$0xff] }
 0x13a   : > { %2023 = vmatpush1.bf16.msra.mxu1 %v4832_v62  ;;  %v4863_v62 = vld [vmem:[#allocation108_spill] sm:$0xff] }
 0x13b   : > { %2024 = vmatprep.subr.bf16.mxu1 %v4834_v5  ;;  %v4865_v5 = vld [vmem:[#allocation110_spill] sm:$0xff] }
 0x13c   : > { %1951 = vmatpush1.bf16.msra.mxu0 %v4835_v15  ;;  %v4866_v15 = vld [vmem:[#allocation111_spill] sm:$0xff] }
 0x13d   : > { %1952 = vmatprep.subr.bf16.mxu0 %v4837_v36  ;;  %v4868_v36 = vld [vmem:[#allocation113_spill] sm:$0xff] }
 0x13e   : > { %2025 = vmatpush1.bf16.msra.mxu1 %v4836_v16  ;;  %v4867_v16 = vld [vmem:[#allocation112_spill] sm:$0xff] }
 0x13f   : > { %2026 = vmatprep.subr.bf16.mxu1 %v4838_v30  ;;  %v1598_v29 = vpop.f32.mrf.mxu0  ;;  %v4869_v30 = vld [vmem:[#allocation114_spill] sm:$0xff] }
 0x140   : > { %1953 = vmatpush2.bf16.msra.mxu0 %v4839_v22  ;;  %v4872_v22 = vld [vmem:[#allocation117_spill] sm:$0xff] }
 0x141   : > { %v1557_v9 = vpop.f32.mrf.mxu1  ;;  %v1600_v32 = vpop.f32.mrf.mxu0  ;;  %1954 = vmatprep.subr.bf16.mxu0 %v4841_v38  ;;  %v2113_v38 = vld [vmem:[%s4534_s5 + $0x58] sm:$0xff] }
 0x142   : > { %v4011_v31 = vadd.f32 %v1598_v29, %v1557_v9  ;;  %2027 = vmatpush1.bf16.msra.mxu1 %v4840_v23  ;;  %v4870_v9 = vld [vmem:[#allocation115_spill] sm:$0xff]  ;;  %v4871_v29 = vld [vmem:[#allocation116_spill] sm:$0xff]  ;;  %v2811_v23 = vld [vmem:[%s4534_s5 + $0x160] sm:$0xff] }
 0x143   : > { %v1559_v28 = vpop.f32.mrf.mxu1  ;;  %2028 = vmatprep.subr.bf16.mxu1 %v4842_v39  ;;  %v1602_v48 = vpop.f32.mrf.mxu0  ;;  %v2810_v39 = vld [vmem:[%s4534_s5 + $0x158] sm:$0xff] }
 0x144   : > { %v4017_v40 = vadd.f32 %v1600_v32, %v1559_v28  ;;  %1955 = vmatpush2.bf16.msra.mxu0 %v4843_v49  ;;  %v2129_v28 = vld [vmem:[%s4534_s5 + $0xd8] sm:$0xff]  ;;  %v2825_v48 = vld [vmem:[%s4534_s5 + $0x1d0] sm:$0xff] }
 0x145   : > { %v1561_v41 = vpop.f32.mrf.mxu1  ;;  %v1603_v57 = vpop.f32.mrf.mxu0  ;;  %1956 = vmatprep.subr.bf16.mxu0 %v4845_v58  ;;  %v2826_v32 = vld [vmem:[%s4534_s5 + $0x1d8] sm:$0xff]  ;;  %v2112_v49 = vld [vmem:[%s4534_s5 + $0x50] sm:$0xff]  ;;  %v2111_v58 = vld [vmem:[%s4534_s5 + $0x48] sm:$0xff] }
 0x146   : > { %2029 = vmatpush1.bf16.msra.mxu1 %v4844_v50  ;;  %v2128_v41 = vld [vmem:[%s4534_s5 + $0xd0] sm:$0xff]  ;;  %v2824_v57 = vld [vmem:[%s4534_s5 + $0x1c8] sm:$0xff] }
 0x147   : > { %v1562_v51 = vpop.f32.mrf.mxu1  ;;  %2030 = vmatprep.subr.bf16.mxu1 %v4846_v59  ;;  %v2809_v50 = vld [vmem:[%s4534_s5 + $0x150] sm:$0xff]  ;;  %v2808_v59 = vld [vmem:[%s4534_s5 + $0x148] sm:$0xff] }
 0x148   : > { %1957 = vmatpush2.bf16.msra.mxu0 %v4847_v60  ;;  %v2127_v51 = vld [vmem:[%s4534_s5 + $0xc8] sm:$0xff]  ;;  %v2126_v60 = vld [vmem:[%s4534_s5 + $0xc0] sm:$0xff] }
 0x149   : > { %1958 = vmatprep.subr.bf16.mxu0 %v4849_v3  ;;  %v2110_v3 = vld [vmem:[%s4534_s5 + $0x40] sm:$0xff] }
 0x14a   : > { %2031 = vmatpush1.bf16.msra.mxu1 %v4848_v1  ;;  %v2823_v1 = vld [vmem:[%s4534_s5 + $0x1c0] sm:$0xff] }
 0x14b   : > { %2032 = vmatprep.subr.bf16.mxu1 %v4850_v4  ;;  %v2807_v4 = vld [vmem:[%s4534_s5 + $0x140] sm:$0xff] }
 0x14c   : > { %1959 = vmatpush2.bf16.msra.mxu0 %v4851_v10  ;;  %v2125_v10 = vld [vmem:[%s4534_s5 + $0xb8] sm:$0xff] }
 0x14d   : > { %1960 = vmatprep.subr.bf16.mxu0 %v4853_v13  ;;  %v2109_v13 = vld [vmem:[%s4534_s5 + $0x38] sm:$0xff] }
 0x14e   : > { %2033 = vmatpush1.bf16.msra.mxu1 %v4852_v11  ;;  %v2822_v11 = vld [vmem:[%s4534_s5 + $0x1b8] sm:$0xff] }
 0x14f   : > { %2034 = vmatprep.subr.bf16.mxu1 %v4854_v14  ;;  %v2806_v14 = vld [vmem:[%s4534_s5 + $0x138] sm:$0xff] }
 0x150   : > { %1961 = vmatpush2.bf16.msra.mxu0 %v4855_v25  ;;  %v2124_v25 = vld [vmem:[%s4534_s5 + $0xb0] sm:$0xff] }
 0x151   : > { %v4031_v21 = vpop.f32.mrf.mxu1  ;;  %1962 = vmatprep.subr.bf16.mxu0 %v4857_v43 }
 0x152   : > { %2035 = vmatpush2.bf16.msra.mxu1 %v4856_v26  ;;  %v2821_v26 = vld [vmem:[%s4534_s5 + $0x1b0] sm:$0xff] }
 0x153   : > { %v4035_v42 = vpop.f32.mrf.mxu1  ;;  %2036 = vmatprep.subr.bf16.mxu1 %v4858_v45  ;;  %v2108_v45 = vld [vmem:[%s4534_s5 + $0x30] sm:$0xff] }
 0x154   : > { %1963 = vmatpush2.bf16.msra.mxu0 %v4859_v56 }
 0x155   : > { %v1684_v55 = vpop.f32.mrf.mxu1  ;;  %1964 = vmatprep.subr.bf16.mxu0 %v4861_v7 }
 0x156   : > { %2037 = vmatpush2.bf16.msra.mxu1 %v4860_v2  ;;  %v2805_v55 = vld [vmem:[%s4534_s5 + $0x130] sm:$0xff]  ;;  %v2123_v2 = vld [vmem:[%s4534_s5 + $0xa8] sm:$0xff] }
 0x157   : > { %v1685_v61 = vpop.f32.mrf.mxu1  ;;  %2038 = vmatprep.subr.bf16.mxu1 %v4862_v19  ;;  %v2107_v19 = vld [vmem:[%s4534_s5 + $0x28] sm:$0xff] }
 0x158   : > { %1965 = vmatpush2.bf16.msra.mxu0 %v4863_v62  ;;  %v2820_v61 = vld [vmem:[%s4534_s5 + $0x1a8] sm:$0xff] }
 0x159   : > { %1966 = vmatprep.subr.bf16.mxu0 %v4865_v5  ;;  %v2819_v5 = vld [vmem:[%s4534_s5 + $0x1a0] sm:$0xff] }
 0x15a   : > { %2039 = vmatpush2.bf16.msra.mxu1 %v4864_v12  ;;  %v2122_v12 = vld [vmem:[%s4534_s5 + $0xa0] sm:$0xff] }
 0x15b   : > { %2040 = vmatprep.subr.bf16.mxu1 %v4866_v15 }
 0x15c   : > { %1967 = vmatpush2.bf16.msra.mxu0 %v4867_v16  ;;  %v2106_v16 = vld [vmem:[%s4534_s5 + $0x20] sm:$0xff] }
 0x15d   : > { %2067 = vmatprep.subr.bf16.mxu0 %v4870_v9 }
 0x15e   : > { %2041 = vmatpush2.bf16.msra.mxu1 %v4868_v36  ;;  %v2121_v36 = vld [vmem:[%s4534_s5 + $0x98] sm:$0xff] }
 0x15f   : > { %2042 = vmatprep.subr.bf16.mxu1 %v4869_v30  ;;  %1969 = vmatmul.mubr.bf16.vlgmr.msra.gmra.mxu0 %v4791_v35  ;;  %v2818_v30 = vld [vmem:[%s4534_s5 + $0x198] sm:$0xff] }
 0x160   : > { %2068 = vmatpush1.bf16.msra.mxu0 %v3824_v0  ;;  %2091 = vmatprep.mubr.bf16.mxu0 %v4689_v46  ;;  %v2133_v46 = vld [vmem:[%s4534_s5 + $0xf8] sm:$0xff] }
 0x161   : > { %2069 = vmatprep.subr.bf16.mxu0 %v4871_v29  ;;  %v2117_v0 = vld [vmem:[%s4534_s5 + $0x78] sm:$0xff] }
 0x162   : > { %2043 = vmatpush2.bf16.msra.mxu1 %v3822_v63  ;;  %v2830_v63 = vld [vmem:[%s4534_s5 + $0x1f8] sm:$0xff] }
 0x163   : > { %2044 = vmatprep.subr.bf16.mxu1 %v3828_v8  ;;  %v2814_v8 = vld [vmem:[%s4534_s5 + $0x178] sm:$0xff] }
 0x164   : > { %2070 = vmatpush1.bf16.msra.mxu0 %v3837_v18  ;;  %v2132_v18 = vld [vmem:[%s4534_s5 + $0xf0] sm:$0xff]  ;;  %v2105_v29 = vld [vmem:[%s4534_s5 + $0x18] sm:$0xff] }
 0x165   : > { %2071 = vmatprep.subr.bf16.mxu0 %v3843_v20  ;;  %v2131_v20 = vld [vmem:[%s4534_s5 + $0xe8] sm:$0xff] }
 0x166   : > { %2045 = vmatpush2.bf16.msra.mxu1 %v4872_v22  ;;  %v2802_v22 = vld [vmem:[%s4534_s5 + $0x118] sm:$0xff] }
 0x167   : > { %2046 = vmatprep.subr.bf16.mxu1 %v3841_v34  ;;  %v2813_v34 = vld [vmem:[%s4534_s5 + $0x170] sm:$0xff] }
 0x168   : > { %2072 = vmatpush1.bf16.msra.mxu0 %v3850_v52  ;;  %v2812_v52 = vld [vmem:[%s4534_s5 + $0x168] sm:$0xff] }
 0x169   : > { %2073 = vmatprep.subr.bf16.mxu0 %v3856_v17  ;;  %v2827_v17 = vld [vmem:[%s4534_s5 + $0x1e0] sm:$0xff] }
 0x16a   : > { %2047 = vmatpush2.bf16.msra.mxu1 %v3848_v47  ;;  %v2828_v47 = vld [vmem:[%s4534_s5 + $0x1e8] sm:$0xff] }
 0x16b   : > { %2048 = vmatprep.subr.bf16.mxu1 %v3854_v53  ;;  %v2130_v53 = vld [vmem:[%s4534_s5 + $0xe0] sm:$0xff] }
 0x16c   : > { %2074 = vmatpush1.bf16.msra.mxu0 %v3862_v54  ;;  %v2116_v54 = vld [vmem:[%s4534_s5 + $0x70] sm:$0xff] }
 0x16d   : > { %2899 = vmatprep.subr.mxu0 %v2830_v63  ;;  %v2817_v63 = vld [vmem:[%s4534_s5 + $0x190] sm:$0xff] }
 0x16e   : > { %2049 = vmatpush2.bf16.msra.mxu1 %v3860_v6  ;;  %v2829_v6 = vld [vmem:[%s4534_s5 + $0x1f0] sm:$0xff] }
 0x16f   : > { %2934 = vmatprep.subr.mxu1 %v2133_v46  ;;  %2798 = vmatmul.mubr.msk.bf16.vlgmr.msra.gmra.mxu0 %vm1437_vm1, %v3366_v37  ;;  %v2115_v37 = vld [vmem:[%s4534_s5 + $0x68] sm:$0xff]  ;;  %v2120_v46 = vld [vmem:[%s4534_s5 + $0x90] sm:$0xff] }
 0x170   : > { %2900 = vmatpush3.msra.mxu0 %v2814_v8  ;;  %v2801_v8 = vld [vmem:[%s4534_s5 + $0x110] sm:$0xff] }
 0x171   : > { %2051 = vmatmul.mubr.bf16.vlgmr.msra.gmra.mxu1 %v4791_v35  ;;  %2901 = vmatprep.subr.mxu0 %v2829_v6  ;;  %v2114_v35 = vld [vmem:[%s4534_s5 + $0x60] sm:$0xff]  ;;  %v2816_v6 = vld [vmem:[%s4534_s5 + $0x188] sm:$0xff] }
 0x172   : > { %2935 = vmatpush3.msra.mxu1 %v2117_v0  ;;  %2902 = vmatpush3.msra.mxu0 %v2813_v34  ;;  %v2104_v0 = vld [vmem:[%s4534_s5 + $0x10] sm:$0xff]  ;;  %v2800_v34 = vld [vmem:[%s4534_s5 + $0x108] sm:$0xff] }
 0x173   : > { %2936 = vmatprep.subr.mxu1 %v2132_v18  ;;  %2903 = vmatprep.subr.mxu0 %v2828_v47  ;;  %v2119_v18 = vld [vmem:[%s4534_s5 + $0x88] sm:$0xff]  ;;  %v2815_v47 = vld [vmem:[%s4534_s5 + $0x180] sm:$0xff] }
 0x174   : > { %2937 = vmatpush3.msra.mxu1 %v2116_v54  ;;  %2904 = vmatpush3.msra.mxu0 %v2812_v52  ;;  %v2103_v54 = vld [vmem:[%s4534_s5 + $0x8] sm:$0xff]  ;;  %v2799_v52 = vld [vmem:[%s4534_s5 + $0x100] sm:$0xff] }
 0x175   : > { %2938 = vmatprep.subr.mxu1 %v2131_v20  ;;  %2905 = vmatprep.subr.mxu0 %v2827_v17  ;;  %v2118_v20 = vld [vmem:[%s4534_s5 + $0x80] sm:$0xff]  ;;  %v2894_v17 = vld [vmem:[%s4534_s5 + $0x3f8] sm:$0xff] }
 0x176   : > { %2939 = vmatpush3.msra.mxu1 %v2115_v37  ;;  %2906 = vmatpush3.msra.mxu0 %v2811_v23  ;;  %v2102_v37 = vld [vmem:[%s4534_s5] sm:$0xff] }
 0x177   : > { %2940 = vmatprep.subr.mxu1 %v2130_v53  ;;  %2907 = vmatprep.subr.mxu0 %v2826_v32  ;;  %v2862_v53 = vld [vmem:[%s4534_s5 + $0x2f8] sm:$0xff] }
 0x178   : > { %2941 = vmatpush3.msra.mxu1 %v2114_v35  ;;  %2908 = vmatpush3.msra.mxu0 %v2810_v39 }
 0x179   : > { %2942 = vmatprep.subr.mxu1 %v2129_v28  ;;  %2909 = vmatprep.subr.mxu0 %v2825_v48 }
 0x17a   : > { %2943 = vmatpush3.msra.mxu1 %v2113_v38  ;;  %2910 = vmatpush3.msra.mxu0 %v2809_v50 }
 0x17b   : > { %2944 = vmatprep.subr.mxu1 %v2128_v41  ;;  %2911 = vmatprep.subr.mxu0 %v2824_v57 }
 0x17c   : > { %2945 = vmatpush3.msra.mxu1 %v2112_v49  ;;  %2912 = vmatpush3.msra.mxu0 %v2808_v59 }
 0x17d   : > { %2946 = vmatprep.subr.mxu1 %v2127_v51  ;;  %2913 = vmatprep.subr.mxu0 %v2823_v1 }
 0x17e   : > { %2947 = vmatpush3.msra.mxu1 %v2111_v58  ;;  %2914 = vmatpush3.msra.mxu0 %v2807_v4  ;;  %v451_v4 = vld [vmem:[%s4533_s4] sm:$0x3] }
 0x17f   : > { %2948 = vmatprep.subr.mxu1 %v2126_v60  ;;  %v1639_v43 = vpop.f32.mrf.mxu0  ;;  %2915 = vmatprep.subr.mxu0 %v2822_v11  ;;  %v453_v60 = vlaneseq }
 0x180   : > { %2949 = vmatpush3.msra.mxu1 %v2110_v3  ;;  %v4191_v56 = vadd.f32 %v4031_v21, %v1639_v43  ;;  %2916 = vmatpush3.msra.mxu0 %v2806_v14  ;;  %v2804_v21 = vld [vmem:[%s4534_s5 + $0x128] sm:$0xff] }
 0x181   : > { %2950 = vmatprep.subr.mxu1 %v2125_v10  ;;  %v1641_v7 = vpop.f32.mrf.mxu0  ;;  %2917 = vmatprep.subr.mxu0 %v2821_v26  ;;  %v454_v1 = vshrl.u32 %v453_v60, 7  ;;  %v2883_v60 = vld [vmem:[%s4534_s5 + $0x3a0] sm:$0xff] }
 0x182   : > { %2951 = vmatpush3.msra.mxu1 %v2109_v13  ;;  %v4206_v62 = vadd.f32 %v4035_v42, %v1641_v7  ;;  %2918 = vmatpush3.msra.mxu0 %v2805_v55  ;;  %v2803_v42 = vld [vmem:[%s4534_s5 + $0x120] sm:$0xff] }
 0x183   : > { %2952 = vmatprep.subr.mxu1 %v2124_v25  ;;  %v1643_v15 = vpop.f32.mrf.mxu0  ;;  %2919 = vmatprep.subr.mxu0 %v2820_v61  ;;  %v459_v3 = vsub.s32 1, %v454_v1  ;;  %v455_v10 = vsub.s32 0, %v454_v1  ;;  %v2843_v1 = vld [vmem:[%s4534_s5 + $0x260] sm:$0xff] }
 0x184   : > { %2953 = vmatpush3.msra.mxu1 %v2108_v45  ;;  %2920 = vmatpush3.msra.mxu0 %v2804_v21  ;;  %v2891_v15 = vld [vmem:[%s4534_s5 + $0x3e0] sm:$0xff] }
 0x185   : > { %2954 = vmatprep.subr.mxu1 %v2123_v2  ;;  %v1644_v9 = vpop.f32.mrf.mxu0  ;;  %2921 = vmatprep.subr.mxu0 %v2819_v5  ;;  %v460_v13 = vrot.slane %v451_v4, %v459_v3  ;;  %v456_v25 = vrot.slane %v451_v4, %v455_v10  ;;  %v2876_v5 = vld [vmem:[%s4534_s5 + $0x368] sm:$0xff]  ;;  %v2867_v3 = vld [vmem:[%s4534_s5 + $0x320] sm:$0xff]  ;;  %v2858_v4 = vld [vmem:[%s4534_s5 + $0x2d8] sm:$0xff] }
 0x186   : > { %2955 = vmatpush3.msra.mxu1 %v2107_v19  ;;  %2922 = vmatpush3.msra.mxu0 %v2803_v42  ;;  %v2890_v42 = vld [vmem:[%s4534_s5 + $0x3d8] sm:$0xff] }
 0x187   : > { %2956 = vmatprep.subr.mxu1 %v2122_v12  ;;  %2923 = vmatprep.subr.mxu0 %v2818_v30  ;;  %v4284_v2 = vmul.f32 %v460_v13, %v3914_v33  ;;  %v4287_v7 = vmul.f32 %v456_v25, %v3910_v27  ;;  %v2877_v27 = vld [vmem:[%s4534_s5 + $0x370] sm:$0xff]  ;;  %v2892_v33 = vld [vmem:[%s4534_s5 + $0x3e8] sm:$0xff]  ;;  %v2874_v9 = vld [vmem:[%s4534_s5 + $0x358] sm:$0xff] }
 0x188   : > { %2957 = vmatpush3.msra.mxu1 %v2106_v16  ;;  %2924 = vmatpush3.msra.mxu0 %v2802_v22  ;;  %v2875_v16 = vld [vmem:[%s4534_s5 + $0x360] sm:$0xff]  ;;  %v2889_v22 = vld [vmem:[%s4534_s5 + $0x3d0] sm:$0xff]  ;;  %v2882_v10 = vld [vmem:[%s4534_s5 + $0x398] sm:$0xff] }
 0x189   : > { %2958 = vmatprep.subr.mxu1 %v2121_v36  ;;  %2925 = vmatprep.subr.mxu0 %v2817_v63  ;;  %v2842_v13 = vld [vmem:[%s4534_s5 + $0x258] sm:$0xff]  ;;  %v2857_v25 = vld [vmem:[%s4534_s5 + $0x2d0] sm:$0xff] }
 0x18a   : > { %2959 = vmatpush3.msra.mxu1 %v2105_v29  ;;  %2926 = vmatpush3.msra.mxu0 %v2801_v8 }
 0x18b   : > { %2960 = vmatprep.subr.mxu1 %v2120_v46  ;;  %2927 = vmatprep.subr.mxu0 %v2816_v6 }
 0x18c   : > { %2961 = vmatpush3.msra.mxu1 %v2104_v0  ;;  %2928 = vmatpush3.msra.mxu0 %v2800_v34  ;;  %v2873_v0 = vld [vmem:[%s4534_s5 + $0x350] sm:$0xff]  ;;  %v2872_v34 = vld [vmem:[%s4534_s5 + $0x348] sm:$0xff] }
 0x18d   : > { %2962 = vmatprep.subr.mxu1 %v2119_v18  ;;  %2929 = vmatprep.subr.mxu0 %v2815_v47  ;;  %v2888_v18 = vld [vmem:[%s4534_s5 + $0x3c8] sm:$0xff]  ;;  %v2887_v47 = vld [vmem:[%s4534_s5 + $0x3c0] sm:$0xff] }
 0x18e   : > { %2963 = vmatpush3.msra.mxu1 %v2103_v54  ;;  %2930 = vmatpush3.msra.mxu0 %v2799_v52  ;;  %v2871_v52 = vld [vmem:[%s4534_s5 + $0x340] sm:$0xff] }
 0x18f   : > { %2964 = vmatprep.subr.mxu1 %v2118_v20  ;;  %v1762_v23 = vpop.f32.mrf.mxu0  ;;  %2969 = vmatprep.subr.mxu0 %v2862_v53 }
 0x190   : > { %2965 = vmatpush3.msra.mxu1 %v2102_v37 }
 0x191   : > { %v1721_v35 = vpop.f32.mrf.mxu1  ;;  %3004 = vmatprep.subr.mxu1 %v2894_v17  ;;  %v1764_v38 = vpop.f32.mrf.mxu0  ;;  %v2886_v17 = vld [vmem:[%s4534_s5 + $0x3b8] sm:$0xff] }
 0x192   : > { %v4274_v28 = vadd.f32 %v1762_v23, %v1721_v35  ;;  %v2846_v23 = vld [vmem:[%s4534_s5 + $0x278] sm:$0xff] }
 0x193   : > { %v1723_v32 = vpop.f32.mrf.mxu1  ;;  %v1766_v48 = vpop.f32.mrf.mxu0 }
 0x194   : > { %v4276_v39 = vadd.f32 %v1764_v38, %v1723_v32  ;;  %v2870_v32 = vld [vmem:[%s4534_s5 + $0x338] sm:$0xff]  ;;  %v2861_v38 = vld [vmem:[%s4534_s5 + $0x2f0] sm:$0xff] }
 0x195   : > { %v1725_v41 = vpop.f32.mrf.mxu1  ;;  %v1767_v50 = vpop.f32.mrf.mxu0  ;;  %v2845_v48 = vld [vmem:[%s4534_s5 + $0x270] sm:$0xff] }
 0x196   : > { %v2885_v41 = vld [vmem:[%s4534_s5 + $0x3b0] sm:$0xff]  ;;  %v2860_v50 = vld [vmem:[%s4534_s5 + $0x2e8] sm:$0xff] }
 0x197   : > { %v1726_v49 = vpop.f32.mrf.mxu1 }
 0x198   : > { %v2869_v49 = vld [vmem:[%s4534_s5 + $0x330] sm:$0xff] }
 0x1a1   : > { %v1847_v51 = vpop.f32.mrf.mxu1 }
 0x1a3   : > { %v1849_v57 = vpop.f32.mrf.mxu1 }
 0x1a5   : > { %v1851_v58 = vpop.f32.mrf.mxu1 }
 0x1a6   : > { %v2868_v58 = vld [vmem:[%s4534_s5 + $0x328] sm:$0xff] }
 0x1a7   : > { %v1852_v59 = vpop.f32.mrf.mxu1 }
 0x1a8   : > { %v2859_v59 = vld [vmem:[%s4534_s5 + $0x2e0] sm:$0xff] }
 0x1cf   : > { %v1806_v11 = vpop.f32.mrf.mxu0 }
 0x1d0   : > { %v1807_v14 = vadd.f32 %v1806_v11, %v3989_v24  ;;  %v2878_v24 = vld [vmem:[%s4534_s5 + $0x378] sm:$0xff] }
 0x1d1   : > { %v1808_v26 = vpop.f32.mrf.mxu0 }
 0x1d2   : > { %v1809_v43 = vadd.f32 %v1808_v26, %v3996_v44  ;;  %v1848_v45 = vadd.f32 %v1847_v51, %v1807_v14  ;;  %v2893_v44 = vld [vmem:[%s4534_s5 + $0x3f0] sm:$0xff]  ;;  %v2884_v51 = vld [vmem:[%s4534_s5 + $0x3a8] sm:$0xff]  ;;  %v2866_v14 = vld [vmem:[%s4534_s5 + $0x318] sm:$0xff] }
 0x1d3   : > { %v1810_v55 = vpop.f32.mrf.mxu0  ;;  %v2881_v26 = vld [vmem:[%s4534_s5 + $0x390] sm:$0xff] }
 0x1d4   : > { %v1850_v61 = vadd.f32 %v1849_v57, %v1809_v43  ;;  %v2100_v12 = vmul.f32 %v1848_v45, %v4287_v7  ;;  %v2844_v57 = vld [vmem:[%s4534_s5 + $0x268] sm:$0xff]  ;;  %v2841_v45 = vld [vmem:[%s4534_s5 + $0x250] sm:$0xff] }
 0x1d5   : > { %v1811_v19 = vpop.f32.mrf.mxu0  ;;  %v2865_v55 = vld [vmem:[%s4534_s5 + $0x310] sm:$0xff] }
 0x1d6   : > { %v2101_v21 = vmul.f32 %v1850_v61, %v4284_v2  ;;  %v2856_v61 = vld [vmem:[%s4534_s5 + $0x2c8] sm:$0xff] }
 0x1d7   : > { %v2880_v19 = vld [vmem:[%s4534_s5 + $0x388] sm:$0xff] }
 0x1d8   : > { %2303 = vmatprep.mubr.f32.mxu1 %v2101_v21 }
 0x1d9   : > { %2304 = vmatmul.mubr.f32.vlgmr.msra.gmra.mxu1 %v2100_v12  ;;  %v2840_v12 = vld [vmem:[%s4534_s5 + $0x248] sm:$0xff] }
 0x1da   : > { %3005 = vmatpush3.msra.mxu1 %v2878_v24  ;;  %v2864_v24 = vld [vmem:[%s4534_s5 + $0x308] sm:$0xff] }
 0x1db   : > { %3006 = vmatprep.subr.mxu1 %v2893_v44  ;;  %v2855_v44 = vld [vmem:[%s4534_s5 + $0x2c0] sm:$0xff] }
 0x1dc   : > { %3007 = vmatpush3.msra.mxu1 %v2877_v27  ;;  %v2879_v27 = vld [vmem:[%s4534_s5 + $0x380] sm:$0xff] }
 0x1dd   : > { %3008 = vmatprep.subr.mxu1 %v2892_v33 }
 0x1de   : > { %3009 = vmatpush3.msra.mxu1 %v2876_v5  ;;  %v2839_v5 = vld [vmem:[%s4534_s5 + $0x240] sm:$0xff] }
 0x1df   : > { %v1929_v30 = vpop.f32.mrf.mxu0  ;;  %3010 = vmatprep.subr.mxu1 %v2891_v15  ;;  %v2863_v15 = vld [vmem:[%s4534_s5 + $0x300] sm:$0xff] }
 0x1e0   : > { %3011 = vmatpush3.msra.mxu1 %v2875_v16  ;;  %v2854_v16 = vld [vmem:[%s4534_s5 + $0x2b8] sm:$0xff] }
 0x1e1   : > { %v1888_v36 = vpop.f32.mrf.mxu1  ;;  %v1931_v63 = vpop.f32.mrf.mxu0  ;;  %3012 = vmatprep.subr.mxu1 %v2890_v42  ;;  %v2838_v42 = vld [vmem:[%s4534_s5 + $0x238] sm:$0xff] }
 0x1e2   : > { %v1889_v29 = vadd.f32 %v1888_v36, %v4011_v31  ;;  %3013 = vmatpush3.msra.mxu1 %v2874_v9  ;;  %v2853_v36 = vld [vmem:[%s4534_s5 + $0x2b0] sm:$0xff]  ;;  %v2852_v9 = vld [vmem:[%s4534_s5 + $0x2a8] sm:$0xff] }
 0x1e3   : > { %v1890_v46 = vpop.f32.mrf.mxu1  ;;  %v1933_v54 = vpop.f32.mrf.mxu0  ;;  %3014 = vmatprep.subr.mxu1 %v2889_v22  ;;  %v2851_v22 = vld [vmem:[%s4534_s5 + $0x2a0] sm:$0xff] }
 0x1e4   : > { %v1891_v8 = vadd.f32 %v1890_v46, %v4017_v40  ;;  %v1930_v31 = vadd.f32 %v1929_v30, %v1889_v29  ;;  %3015 = vmatpush3.msra.mxu1 %v2873_v0  ;;  %v2837_v30 = vld [vmem:[%s4534_s5 + $0x230] sm:$0xff]  ;;  %v2836_v29 = vld [vmem:[%s4534_s5 + $0x228] sm:$0xff]  ;;  %v2835_v46 = vld [vmem:[%s4534_s5 + $0x220] sm:$0xff] }
 0x1e5   : > { %v1892_v6 = vpop.f32.mrf.mxu1  ;;  %v1934_v37 = vpop.f32.mrf.mxu0  ;;  %3016 = vmatprep.subr.mxu1 %v2888_v18  ;;  %v2834_v0 = vld [vmem:[%s4534_s5 + $0x218] sm:$0xff]  ;;  %v2833_v18 = vld [vmem:[%s4534_s5 + $0x210] sm:$0xff]  ;;  %v2847_v54 = vld [vmem:[%s4534_s5 + $0x280] sm:$0xff] }
 0x1e6   : > { %v1932_v20 = vadd.f32 %v1931_v63, %v1891_v8  ;;  %3017 = vmatpush3.msra.mxu1 %v2872_v34  ;;  %v2134_v35 = vmul.f32 %v1930_v31, %v4287_v7  ;;  %v2850_v63 = vld [vmem:[%s4534_s5 + $0x298] sm:$0xff]  ;;  %v2849_v8 = vld [vmem:[%s4534_s5 + $0x290] sm:$0xff]  ;;  %v2848_v31 = vld [vmem:[%s4534_s5 + $0x288] sm:$0xff] }
 0x1e7   : > { %v1893_v40 = vpop.f32.mrf.mxu1  ;;  %3018 = vmatprep.subr.mxu1 %v2887_v47  ;;  %v2832_v6 = vld [vmem:[%s4534_s5 + $0x208] sm:$0xff]  ;;  %v2831_v34 = vld [vmem:[%s4534_s5 + $0x200] sm:$0xff] }
 0x1e8   : > { %v2135_v53 = vmul.f32 %v1932_v20, %v4284_v2  ;;  %3019 = vmatpush3.msra.mxu1 %v2871_v52 }
 0x1e9   : > { %3020 = vmatprep.subr.mxu1 %v2886_v17 }
 0x1ea   : > { %2233 = vmatprep.mubr.f32.mxu0 %v2135_v53  ;;  %3021 = vmatpush3.msra.mxu1 %v2870_v32 }
 0x1eb   : > { %2234 = vmatmul.mubr.f32.vlgmr.msra.gmra.mxu0 %v2134_v35  ;;  %3022 = vmatprep.subr.mxu1 %v2885_v41 }
 0x1ec   : > { %2970 = vmatpush3.msra.mxu0 %v2846_v23  ;;  %3023 = vmatpush3.msra.mxu1 %v2869_v49 }
 0x1ed   : > { %2971 = vmatprep.subr.mxu0 %v2861_v38  ;;  %3024 = vmatprep.subr.mxu1 %v2884_v51 }
 0x1ee   : > { %2972 = vmatpush3.msra.mxu0 %v2845_v48  ;;  %3025 = vmatpush3.msra.mxu1 %v2868_v58 }
 0x1ef   : > { %2973 = vmatprep.subr.mxu0 %v2860_v50  ;;  %3026 = vmatprep.subr.mxu1 %v2883_v60 }
 0x1f0   : > { %2974 = vmatpush3.msra.mxu0 %v2844_v57  ;;  %3027 = vmatpush3.msra.mxu1 %v2867_v3 }
 0x1f1   : > { %v4391_v11 = vpop.f32.mrf.mxu1  ;;  %2975 = vmatprep.subr.mxu0 %v2859_v59  ;;  %3028 = vmatprep.subr.mxu1 %v2882_v10 }
 0x1f2   : > { %2976 = vmatpush3.msra.mxu0 %v2843_v1  ;;  %3029 = vmatpush3.msra.mxu1 %v2866_v14 }
 0x1f3   : > { %v4405_v43 = vpop.f32.mrf.mxu1  ;;  %2977 = vmatprep.subr.mxu0 %v2858_v4  ;;  %3030 = vmatprep.subr.mxu1 %v2881_v26 }
 0x1f4   : > { %2978 = vmatpush3.msra.mxu0 %v2842_v13  ;;  %3031 = vmatpush3.msra.mxu1 %v2865_v55 }
 0x1f5   : > { %v2015_v21 = vpop.f32.mrf.mxu1  ;;  %2979 = vmatprep.subr.mxu0 %v2857_v25  ;;  %3032 = vmatprep.subr.mxu1 %v2880_v19 }
 0x1f6   : > { %2980 = vmatpush3.msra.mxu0 %v2841_v45  ;;  %3033 = vmatpush3.msra.mxu1 %v2864_v24 }
 0x1f7   : > { %v2016_v33 = vpop.f32.mrf.mxu1  ;;  %2981 = vmatprep.subr.mxu0 %v2856_v61  ;;  %3034 = vmatprep.subr.mxu1 %v2879_v27 }
 0x1f8   : > { %2982 = vmatpush3.msra.mxu0 %v2840_v12  ;;  %3035 = vmatpush3.msra.mxu1 %v2863_v15 }
 0x1f9   : > { %2983 = vmatprep.subr.mxu0 %v2855_v44 }
 0x1fa   : > { %2984 = vmatpush3.msra.mxu0 %v2839_v5 }
 0x1fb   : > { %2985 = vmatprep.subr.mxu0 %v2854_v16 }
 0x1fc   : > { %2986 = vmatpush3.msra.mxu0 %v2838_v42 }
 0x1fd   : > { %2987 = vmatprep.subr.mxu0 %v2853_v36 }
 0x1fe   : > { %2988 = vmatpush3.msra.mxu0 %v2837_v30 }
 0x1ff   : > { %2989 = vmatprep.subr.mxu0 %v2852_v9 }
 0x200   : > { %2990 = vmatpush3.msra.mxu0 %v2836_v29 }
 0x201   : > { %2991 = vmatprep.subr.mxu0 %v2851_v22 }
 0x202   : > { %2992 = vmatpush3.msra.mxu0 %v2835_v46 }
 0x203   : > { %2993 = vmatprep.subr.mxu0 %v2850_v63 }
 0x204   : > { %2994 = vmatpush3.msra.mxu0 %v2834_v0 }
 0x205   : > { %2995 = vmatprep.subr.mxu0 %v2849_v8 }
 0x206   : > { %2996 = vmatpush3.msra.mxu0 %v2833_v18 }
 0x207   : > { %2997 = vmatprep.subr.mxu0 %v2848_v31 }
 0x208   : > { %2998 = vmatpush3.msra.mxu0 %v2832_v6 }
 0x209   : > { %2999 = vmatprep.subr.mxu0 %v2847_v54 }
 0x20a   : > { %3000 = vmatpush3.msra.mxu0 %v2831_v34 }
 0x21f   : > { %v1970_v20 = vpop.f32.mrf.mxu0 }
 0x220   : > { %v1971_v47 = vadd.f32 %v1970_v20, %v4191_v56 }
 0x221   : > { %v1972_v40 = vpop.f32.mrf.mxu0 }
 0x222   : > { %v1973_v37 = vadd.f32 %v1972_v40, %v4206_v62  ;;  %v2012_v52 = vadd.f32 %v4391_v11, %v1971_v47 }
 0x223   : > { %v1974_v53 = vpop.f32.mrf.mxu0 }
 0x224   : > { %v2014_v17 = vadd.f32 %v4405_v43, %v1973_v37  ;;  %v2309_v32 = vmul.f32 %v2012_v52, %v4287_v7 }
 0x225   : > { %v1975_v35 = vpop.f32.mrf.mxu0 }
 0x226   : > { %v2310_v23 = vmul.f32 %v2014_v17, %v4284_v2 }
 0x228   : > { %2408 = vmatprep.mubr.f32.mxu0 %v2310_v23 }
 0x229   : > { %2409 = vmatmul.mubr.f32.vlgmr.msra.gmra.mxu0 %v2309_v32 }
 0x22f   : > { %v2093_v41 = vpop.f32.mrf.mxu0 }
 0x231   : > { %v2052_v38 = vpop.f32.mrf.mxu1  ;;  %v2095_v49 = vpop.f32.mrf.mxu0 }
 0x232   : > { %v2053_v48 = vadd.f32 %v2052_v38, %v4274_v28 }
 0x233   : > { %v2054_v56 = vpop.f32.mrf.mxu1  ;;  %v2097_v57 = vpop.f32.mrf.mxu0 }
 0x234   : > { %v2055_v62 = vadd.f32 %v2054_v56, %v4276_v39  ;;  %v2094_v50 = vadd.f32 %v2093_v41, %v2053_v48 }
 0x235   : > { %v2056_v51 = vpop.f32.mrf.mxu1  ;;  %v2098_v60 = vpop.f32.mrf.mxu0 }
 0x236   : > { %v2096_v58 = vadd.f32 %v2095_v49, %v2055_v62  ;;  %v2415_v3 = vmul.f32 %v2094_v50, %v4287_v7 }
 0x237   : > { %v2057_v59 = vpop.f32.mrf.mxu1 }
 0x238   : > { %v2416_v1 = vmul.f32 %v2096_v58, %v4284_v2 }
 0x23a   : > { %2514 = vmatprep.mubr.f32.mxu1 %v2416_v1 }
 0x23b   : > { %2515 = vmatmul.mubr.f32.vlgmr.msra.gmra.mxu1 %v2415_v3 }
 0x299   : > { %v2966_v10 = vpop.f32.mrf.mxu1 }
 0x29b   : > { %v2967_v13 = vpop.f32.mrf.mxu1 }
 0x29c   : > { %v2968_v25 = vadd.f32 %v2967_v13, %v2966_v10 }
 0x2ab   : > { %v2931_v4 = vpop.f32.mrf.mxu0 }
 0x2ad   : > { %v2932_v28 = vpop.f32.mrf.mxu0 }
 0x2ae   : > { %v2933_v14 = vadd.f32 %v2932_v28, %v2931_v4 }
 0x2b0   : > { %v2306_v45 = vadd.f32 %v2968_v25, %v2933_v14 }
 0x2e9   : > { %v3001_v11 = vpop.f32.mrf.mxu0 }
 0x2eb   : > { %v3002_v39 = vpop.f32.mrf.mxu0 }
 0x2ec   : > { %v3003_v26 = vadd.f32 %v3002_v39, %v3001_v11 }
 0x2ee   : > { %v2414_v7 = vadd.f32 %v3003_v26, %v2306_v45 }
 0x2fb   : > { %v3036_v43 = vpop.f32.mrf.mxu1 }
 0x2fd   : > { %v3037_v2 = vpop.f32.mrf.mxu1 }
 0x2fe   : > { %v3038_v55 = vadd.f32 %v3037_v2, %v3036_v43 }
 0x300   : > { %v2520_v61 = vadd.f32 %v3038_v55, %v2414_v7 }
 0x302   : > { %2522 = vst.msk [vmem:[%s272_s29] sm:$0xff] %vm2521_vm2, %v2520_v61 }
 0x303   : > { %3133 = shalt.err (!%p3130_p0)
}
 0x304   : > { %s3134_s12 = scalar_lea.hbm %s2535_s10, 128  ;;  %s3138_s20 = scalar_lea.hbm %s4535_s6, 256 }
 0x305   : > { %p3135_p1 = scmp.ne.s32.totalorder %s2535_s10, %s3134_s12  ;;  %p3139_p4 = scmp.lt.s32.totalorder %s2535_s10, %s4535_s6 }
 0x306   : > { %p3140_p7 = scmp.lt.s32.totalorder %s3138_s20, %s3134_s12 }
 0x307   : > { %p3136_p2 = pnand %p3135_p1, %p3265_p5 }
 0x308   : > { %p3141_p8 = por %p3140_p7, %p3139_p4 }
 0x309   : > { %p3137_p3 = pneg %p3136_p2 }
 0x30b   : > { %p3142_p6 = pnand %p3141_p8, %p3137_p3 }
 0x30d   : > { %3145 = shalt.err (!%p3142_p6)
}
 0x30e   : > { %3044 = dma.vmem_to_hbm [thread:$0]  (%p3265_p5), %s2538_s19, 128, %s2535_s10, %s2524_s11  }
 0x30f PF: > { %p3056_p9 = scmp.ge.s32.totalorder %s3184_s24, 2  ;;  %s2549_s29 = sand.u32 1, %s3172_s21  }
 0x310   : > { %p4873_p10 = scmp.ne.s32.totalorder %s4650_s8, 0  ;;  %s2550_s18 = scalar_lea.sflag [#allocation4], %s2549_s29 }
 0x312   : > { %p3051_p11 = pnand %p3056_p9, %p4873_p10 }
 0x314   : > { %p3052_p12 = pneg %p3051_p11 }
 0x316   : > { %3167 = dma.done.wait (%p3052_p12), %s2550_s18, 128  }
 0x317   : > { %3169 = vsyncadd (%p3052_p12), %s2550_s18, 4294967168  ;;  %p17_p13 = scmp.ge.s32.totalorder %s3252_s27, 4   ;;  %s4874_s21 = smov %s3176_s22 }
 0x318   : > { %s4875_s22 = smov %s3180_s23  ;;  %s4876_s23 = smov %s3263_s30 }
 0x319   : > { %s4877_s24 = smov %s3252_s27  ;;  %19 = sbr.rel (!%p17_p13) target bundleno = 4 (0x4), region = 90 }
 0x31e   :  { %2555 = vsyncpa [#allocation3], 1 }
 0x31f   :  { %2557 = vsyncpa [#allocation3 + $0x1], 1 }
 0x320   :  { %2558 = vsyncpa [#allocation4], 1 }
 0x321   :  { %2560 = vsyncpa [#allocation4 + $0x1], 1 }

</bundles_post_ra>
